<compile_context>
chip_gen: v5e
topology: v5e:2x2
jax: 0.10.0
libtpu: 0.0.40
codegen_flags: <defaults>
</compile_context>

<pallas_src>
import math

import jax
import jax.numpy as jnp
from jax import lax
from jax.experimental import pallas as pl
from jax.experimental.pallas import tpu as pltpu


def make_attention_kernel(batch: int, seq_len: int, num_heads: int, head_dim: int):
    B, N, H, hd = batch, seq_len, num_heads, head_dim
    C = H * hd

    def kernel(x_ref, wqkv_ref, wproj_ref, bproj_ref, o_ref, attn_out_ref):
        # x_ref:        (B*N, C)  bf16   batch folded into matmul rows
        # wqkv_ref:     (C, 3C)   bf16   pre-transposed, softmax scale folded into q cols
        # wproj_ref:    (C, C)    bf16   pre-transposed (in, out)
        # bproj_ref:    (1, C)    f32
        # o_ref:        (B*N, C)  f32
        # attn_out_ref: (B*N, C)  bf16   VMEM scratch: re-concatenated heads
        x = x_ref[...]

        # Head-fused qkv projection for ALL batch rows: one MXU matmul, f32 acc.
        # Kept in f32; slices are cast to bf16 right before their dots.
        qkv = jnp.dot(x, wqkv_ref[...], preferred_element_type=jnp.float32)  # (B*N, 3C)

        # Per-(batch, head) attention with static slices.
        # TODO(synk): at ViT scale replace with lax.fori_loop over heads + a q-tile
        # grid axis (online softmax) to bound (N, N) score liveness.
        for b in range(B):
            r0 = b * N
            for h in range(H):
                c0 = h * hd
                q = qkv[r0:r0 + N, c0:c0 + hd].astype(jnp.bfloat16)           # scale pre-applied
                k = qkv[r0:r0 + N, C + c0:C + c0 + hd].astype(jnp.bfloat16)
                v = qkv[r0:r0 + N, 2 * C + c0:2 * C + c0 + hd].astype(jnp.bfloat16)

                # q @ k^T without materializing the transpose (MXU contracts dim 1 of both).
                s = lax.dot_general(q, k, (((1,), (1,)), ((), ())),
                                    preferred_element_type=jnp.float32)       # (N, N) f32

                # Numerically stable softmax in f32; EUP reciprocal for the denominator.
                s = s - jnp.max(s, axis=-1, keepdims=True)
                p = jnp.exp(s)
                p = p * pl.reciprocal(jnp.sum(p, axis=-1, keepdims=True), approx=True)

                o_h = jnp.dot(p.astype(jnp.bfloat16), v,
                              preferred_element_type=jnp.float32)             # (N, hd) f32

                # Re-concatenate heads: write this head's slab into the (B*N, C)
                # scratch so the output projection runs as ONE K = C matmul.
                attn_out_ref[r0:r0 + N, c0:c0 + hd] = o_h.astype(jnp.bfloat16)

        # Single (B*N, C) @ (C, C) output projection + bias, f32 accumulation.
        y = jnp.dot(attn_out_ref[...], wproj_ref[...],
                    preferred_element_type=jnp.float32)                       # (B*N, C)
        o_ref[...] = (y + bproj_ref[...]).astype(o_ref.dtype)

    return kernel


def attention_pallas(x, w_qkv, w_proj, b_proj, *, num_heads):
    """x: (B, N, C) f32.  w_qkv: (3C, C), w_proj: (C, C), b_proj: (C,)
    (PyTorch nn.Linear weight layout: out_features x in_features)."""
    B, N, C = x.shape
    H = num_heads
    hd = C // H
    BN = B * N
    scale = hd ** (-0.5)

    # --- host-side preprocessing (free at runtime) ---
    # pre-transpose to (in, out), fold the softmax scale into the q columns,
    # cast matmul weights to bf16 (f32 accumulation happens on the MXU).
    wqkv_t = jnp.concatenate(
        [jnp.asarray(w_qkv[:C]).T * scale,      # q columns, pre-scaled
         jnp.asarray(w_qkv[C:]).T],             # k, v columns
        axis=1).astype(jnp.bfloat16)                                   # (C, 3C)
    wproj_t = jnp.asarray(w_proj).T.astype(jnp.bfloat16)               # (C, C)
    bproj2d = jnp.asarray(b_proj).reshape(1, C).astype(jnp.float32)    # (1, C)
    x2d = x.reshape(BN, C).astype(jnp.bfloat16)                        # batch folded into M

    kernel = make_attention_kernel(B, N, H, hd)

    flops = (2 * BN * C * 3 * C            # qkv projection
             + 4 * B * H * N * N * hd      # q@k^T and p@v
             + 2 * BN * C * C)             # output projection
    bytes_accessed = (BN * C * 2                                   # x (bf16)
                      + 3 * C * C * 2 + C * C * 2 + C * 4          # weights + bias
                      + BN * C * 4)                                # output (f32)
    cost = pl.CostEstimate(flops=flops, transcendentals=B * H * N * N,
                           bytes_accessed=bytes_accessed)

    out2d = pl.pallas_call(
        kernel,
        out_shape=jax.ShapeDtypeStruct((BN, C), jnp.float32),
        grid_spec=pltpu.PrefetchScalarGridSpec(
            num_scalar_prefetch=0,
            grid=(1,),                                         # single step: whole problem is one tile
            in_specs=[
                pl.BlockSpec((BN, C), lambda i: (0, 0)),        # x, batch-folded
                pl.BlockSpec((C, 3 * C), lambda i: (0, 0)),     # qkv weight (resident)
                pl.BlockSpec((C, C), lambda i: (0, 0)),         # proj weight (resident)
                pl.BlockSpec((1, C), lambda i: (0, 0)),         # proj bias
            ],
            out_specs=pl.BlockSpec((BN, C), lambda i: (0, 0)),
            scratch_shapes=[pltpu.VMEM((BN, C), jnp.bfloat16)], # re-concatenated heads
        ),
        compiler_params=pltpu.CompilerParams(
            dimension_semantics=("arbitrary",),
            vmem_limit_bytes=32 * 1024 * 1024,                  # raise v5e's 16 MiB default scope
        ),
        cost_estimate=cost,
    )(x2d, wqkv_t, wproj_t, bproj2d)

    return out2d.reshape(B, N, C)


def attention_reference(x, w_qkv, w_proj, b_proj, *, num_heads):
    """Pure-JAX f32 reference mirroring the PyTorch forward exactly."""
    B, N, C = x.shape
    head_dim = C // num_heads
    scale = head_dim ** (-0.5)
    qkv = x @ w_qkv.T                                            # (B, N, 3C)
    qkv = qkv.reshape(B, N, 3, num_heads, head_dim).transpose(2, 0, 3, 1, 4)
    q, k, v = qkv[0], qkv[1], qkv[2]                             # (B, H, N, hd)
    attn = jnp.einsum("bhnd,bhmd->bhnm", q, k) * scale
    attn = jax.nn.softmax(attn, axis=-1)
    out = jnp.einsum("bhnm,bhmd->bhnd", attn, v)                 # (B, H, N, hd)
    out = out.transpose(0, 2, 1, 3).reshape(B, N, C)
    return out @ w_proj.T + b_proj


if __name__ == "__main__":
    # Small shapes consistent with the module: B=2, N=8 tokens, C=64 channels, 8 heads.
    B, N, C = 2, 8, 64
    num_heads = 8

    key = jax.random.PRNGKey(0)
    kx, kq, kp, kb = jax.random.split(key, 4)

    x = jax.random.normal(kx, (B, N, C), dtype=jnp.float32)

    # Deterministic parameter init (PyTorch nn.Linear-style uniform(+-1/sqrt(fan_in))).
    bound = 1.0 / math.sqrt(C)
    w_qkv = jax.random.uniform(kq, (3 * C, C), jnp.float32, -bound, bound)   # qkv_bias=False
    w_proj = jax.random.uniform(kp, (C, C), jnp.float32, -bound, bound)
    b_proj = jax.random.uniform(kb, (C,), jnp.float32, -bound, bound)

    out = attention_pallas(x, w_qkv, w_proj, b_proj, num_heads=num_heads)
    out = jax.block_until_ready(out)

    ref = attention_reference(x, w_qkv, w_proj, b_proj, num_heads=num_heads)
    assert out.shape == (B, N, C)
    # bf16 matmul operands (f32 accumulation) + approx reciprocal -> relaxed tolerance.
    assert jnp.allclose(out, ref, atol=3e-2, rtol=3e-2), "mismatch vs pure-JAX reference"

    print("KERNEL_OK")
</pallas_src>

<mosaic_0001>
module attributes {stable_mosaic.version = 11 : i64} {
  func.func @kernel(%arg0: i32, %arg1: memref<16x64xbf16, #tpu.memory_space<vmem>>, %arg2: memref<64x192xbf16, #tpu.memory_space<vmem>>, %arg3: memref<64x64xbf16, #tpu.memory_space<vmem>>, %arg4: memref<1x64xf32, #tpu.memory_space<vmem>>, %arg5: memref<16x64xf32, #tpu.memory_space<vmem>>, %arg6: memref<16x64xbf16, #tpu.memory_space<vmem>>) attributes {dimension_semantics = [#tpu.dimension_semantics<arbitrary>], iteration_bounds = array<i64: 1>, scalar_prefetch = 0 : i64, scratch_operands = 1 : i64, tpu.core_type = #tpu.core_type<tc>, window_params = [{pipeline_mode = #tpu.pipeline_mode<synchronous>, transform_indices = @transform_0, window_bounds = array<i64: 16, 64>}, {pipeline_mode = #tpu.pipeline_mode<synchronous>, transform_indices = @transform_1, window_bounds = array<i64: 64, 192>}, {pipeline_mode = #tpu.pipeline_mode<synchronous>, transform_indices = @transform_2, window_bounds = array<i64: 64, 64>}, {pipeline_mode = #tpu.pipeline_mode<synchronous>, transform_indices = @transform_3, window_bounds = array<i64: 1, 64>}, {pipeline_mode = #tpu.pipeline_mode<synchronous>, transform_indices = @transform_4, window_bounds = array<i64: 16, 64>}]} {
    %c0 = arith.constant 0 : index
    %c0_0 = arith.constant 0 : index
    %0 = vector.load %arg1[%c0, %c0_0] : memref<16x64xbf16, #tpu.memory_space<vmem>>, vector<16x64xbf16>
    %c0_1 = arith.constant 0 : index
    %c0_2 = arith.constant 0 : index
    %1 = vector.load %arg2[%c0_1, %c0_2] : memref<64x192xbf16, #tpu.memory_space<vmem>>, vector<64x192xbf16>
    %cst = arith.constant dense<0.000000e+00> : vector<16x192xf32>
    %2 = tpu.matmul %0, %1, %cst {dimension_numbers = #tpu.dot_dimension_numbers<[1], [0], [0], [1], [0, 0, 1, 1], [], []>} : vector<16x64xbf16>, vector<64x192xbf16>, vector<16x192xf32> -> vector<16x192xf32>
    %3 = vector.extract_strided_slice %2 {offsets = [0, 0], sizes = [8, 8], strides = [1, 1]} : vector<16x192xf32> to vector<8x8xf32>
    %4 = arith.truncf %3 : vector<8x8xf32> to vector<8x8xbf16>
    %5 = vector.extract_strided_slice %2 {offsets = [0, 64], sizes = [8, 8], strides = [1, 1]} : vector<16x192xf32> to vector<8x8xf32>
    %6 = arith.truncf %5 : vector<8x8xf32> to vector<8x8xbf16>
    %7 = vector.extract_strided_slice %2 {offsets = [0, 128], sizes = [8, 8], strides = [1, 1]} : vector<16x192xf32> to vector<8x8xf32>
    %8 = arith.truncf %7 : vector<8x8xf32> to vector<8x8xbf16>
    %cst_3 = arith.constant dense<0.000000e+00> : vector<8x8xf32>
    %9 = tpu.matmul %4, %6, %cst_3 {dimension_numbers = #tpu.dot_dimension_numbers<[1], [1], [0], [0], [0, 0, 1, 0], [], []>} : vector<8x8xbf16>, vector<8x8xbf16>, vector<8x8xf32> -> vector<8x8xf32>
    %cst_4 = arith.constant dense<0xFF800000> : vector<8xf32>
    %10 = vector.multi_reduction <maximumf>, %9, %cst_4 [1] : vector<8x8xf32> to vector<8xf32>
    %11 = vector.shape_cast %10 : vector<8xf32> to vector<8x1xf32>
    %12 = vector.broadcast %11 : vector<8x1xf32> to vector<8x8xf32>
    %13 = arith.subf %9, %12 : vector<8x8xf32>
    %14 = math.exp %13 : vector<8x8xf32>
    %cst_5 = arith.constant dense<0.000000e+00> : vector<8xf32>
    %15 = vector.multi_reduction <add>, %14, %cst_5 [1] : vector<8x8xf32> to vector<8xf32>
    %16 = vector.shape_cast %15 : vector<8xf32> to vector<8x1xf32>
    %17 = tpu.reciprocal %16 {approx = true} : vector<8x1xf32> -> vector<8x1xf32>
    %18 = vector.broadcast %17 : vector<8x1xf32> to vector<8x8xf32>
    %19 = arith.mulf %14, %18 : vector<8x8xf32>
    %20 = arith.truncf %19 : vector<8x8xf32> to vector<8x8xbf16>
    %cst_6 = arith.constant dense<0.000000e+00> : vector<8x8xf32>
    %21 = tpu.matmul %20, %8, %cst_6 {dimension_numbers = #tpu.dot_dimension_numbers<[1], [0], [0], [1], [0, 0, 1, 1], [], []>} : vector<8x8xbf16>, vector<8x8xbf16>, vector<8x8xf32> -> vector<8x8xf32>
    %22 = arith.truncf %21 : vector<8x8xf32> to vector<8x8xbf16>
    %c0_7 = arith.constant 0 : index
    %c0_8 = arith.constant 0 : index
    %23 = vector.load %arg6[%c0_7, %c0_8] : memref<16x64xbf16, #tpu.memory_space<vmem>>, vector<8x8xbf16>
    tpu.vector_store %arg6[%c0_7, %c0_8], %22 {strides = array<i32>} : memref<16x64xbf16, #tpu.memory_space<vmem>>, vector<8x8xbf16>,
    %24 = vector.extract_strided_slice %2 {offsets = [0, 8], sizes = [8, 8], strides = [1, 1]} : vector<16x192xf32> to vector<8x8xf32>
    %25 = arith.truncf %24 : vector<8x8xf32> to vector<8x8xbf16>
    %26 = vector.extract_strided_slice %2 {offsets = [0, 72], sizes = [8, 8], strides = [1, 1]} : vector<16x192xf32> to vector<8x8xf32>
    %27 = arith.truncf %26 : vector<8x8xf32> to vector<8x8xbf16>
    %28 = vector.extract_strided_slice %2 {offsets = [0, 136], sizes = [8, 8], strides = [1, 1]} : vector<16x192xf32> to vector<8x8xf32>
    %29 = arith.truncf %28 : vector<8x8xf32> to vector<8x8xbf16>
    %cst_9 = arith.constant dense<0.000000e+00> : vector<8x8xf32>
    %30 = tpu.matmul %25, %27, %cst_9 {dimension_numbers = #tpu.dot_dimension_numbers<[1], [1], [0], [0], [0, 0, 1, 0], [], []>} : vector<8x8xbf16>, vector<8x8xbf16>, vector<8x8xf32> -> vector<8x8xf32>
    %cst_10 = arith.constant dense<0xFF800000> : vector<8xf32>
    %31 = vector.multi_reduction <maximumf>, %30, %cst_10 [1] : vector<8x8xf32> to vector<8xf32>
    %32 = vector.shape_cast %31 : vector<8xf32> to vector<8x1xf32>
    %33 = vector.broadcast %32 : vector<8x1xf32> to vector<8x8xf32>
    %34 = arith.subf %30, %33 : vector<8x8xf32>
    %35 = math.exp %34 : vector<8x8xf32>
    %cst_11 = arith.constant dense<0.000000e+00> : vector<8xf32>
    %36 = vector.multi_reduction <add>, %35, %cst_11 [1] : vector<8x8xf32> to vector<8xf32>
    %37 = vector.shape_cast %36 : vector<8xf32> to vector<8x1xf32>
    %38 = tpu.reciprocal %37 {approx = true} : vector<8x1xf32> -> vector<8x1xf32>
    %39 = vector.broadcast %38 : vector<8x1xf32> to vector<8x8xf32>
    %40 = arith.mulf %35, %39 : vector<8x8xf32>
    %41 = arith.truncf %40 : vector<8x8xf32> to vector<8x8xbf16>
    %cst_12 = arith.constant dense<0.000000e+00> : vector<8x8xf32>
    %42 = tpu.matmul %41, %29, %cst_12 {dimension_numbers = #tpu.dot_dimension_numbers<[1], [0], [0], [1], [0, 0, 1, 1], [], []>} : vector<8x8xbf16>, vector<8x8xbf16>, vector<8x8xf32> -> vector<8x8xf32>
    %43 = arith.truncf %42 : vector<8x8xf32> to vector<8x8xbf16>
    %c0_13 = arith.constant 0 : index
    %c8 = arith.constant 8 : index
    %44 = vector.load %arg6[%c0_13, %c8] : memref<16x64xbf16, #tpu.memory_space<vmem>>, vector<8x8xbf16>
    tpu.vector_store %arg6[%c0_13, %c8], %43 {strides = array<i32>} : memref<16x64xbf16, #tpu.memory_space<vmem>>, vector<8x8xbf16>,
    %45 = vector.extract_strided_slice %2 {offsets = [0, 16], sizes = [8, 8], strides = [1, 1]} : vector<16x192xf32> to vector<8x8xf32>
    %46 = arith.truncf %45 : vector<8x8xf32> to vector<8x8xbf16>
    %47 = vector.extract_strided_slice %2 {offsets = [0, 80], sizes = [8, 8], strides = [1, 1]} : vector<16x192xf32> to vector<8x8xf32>
    %48 = arith.truncf %47 : vector<8x8xf32> to vector<8x8xbf16>
    %49 = vector.extract_strided_slice %2 {offsets = [0, 144], sizes = [8, 8], strides = [1, 1]} : vector<16x192xf32> to vector<8x8xf32>
    %50 = arith.truncf %49 : vector<8x8xf32> to vector<8x8xbf16>
    %cst_14 = arith.constant dense<0.000000e+00> : vector<8x8xf32>
    %51 = tpu.matmul %46, %48, %cst_14 {dimension_numbers = #tpu.dot_dimension_numbers<[1], [1], [0], [0], [0, 0, 1, 0], [], []>} : vector<8x8xbf16>, vector<8x8xbf16>, vector<8x8xf32> -> vector<8x8xf32>
    %cst_15 = arith.constant dense<0xFF800000> : vector<8xf32>
    %52 = vector.multi_reduction <maximumf>, %51, %cst_15 [1] : vector<8x8xf32> to vector<8xf32>
    %53 = vector.shape_cast %52 : vector<8xf32> to vector<8x1xf32>
    %54 = vector.broadcast %53 : vector<8x1xf32> to vector<8x8xf32>
    %55 = arith.subf %51, %54 : vector<8x8xf32>
    %56 = math.exp %55 : vector<8x8xf32>
    %cst_16 = arith.constant dense<0.000000e+00> : vector<8xf32>
    %57 = vector.multi_reduction <add>, %56, %cst_16 [1] : vector<8x8xf32> to vector<8xf32>
    %58 = vector.shape_cast %57 : vector<8xf32> to vector<8x1xf32>
    %59 = tpu.reciprocal %58 {approx = true} : vector<8x1xf32> -> vector<8x1xf32>
    %60 = vector.broadcast %59 : vector<8x1xf32> to vector<8x8xf32>
    %61 = arith.mulf %56, %60 : vector<8x8xf32>
    %62 = arith.truncf %61 : vector<8x8xf32> to vector<8x8xbf16>
    %cst_17 = arith.constant dense<0.000000e+00> : vector<8x8xf32>
    %63 = tpu.matmul %62, %50, %cst_17 {dimension_numbers = #tpu.dot_dimension_numbers<[1], [0], [0], [1], [0, 0, 1, 1], [], []>} : vector<8x8xbf16>, vector<8x8xbf16>, vector<8x8xf32> -> vector<8x8xf32>
    %64 = arith.truncf %63 : vector<8x8xf32> to vector<8x8xbf16>
    %c0_18 = arith.constant 0 : index
    %c16 = arith.constant 16 : index
    %65 = vector.load %arg6[%c0_18, %c16] : memref<16x64xbf16, #tpu.memory_space<vmem>>, vector<8x8xbf16>
    tpu.vector_store %arg6[%c0_18, %c16], %64 {strides = array<i32>} : memref<16x64xbf16, #tpu.memory_space<vmem>>, vector<8x8xbf16>,
    %66 = vector.extract_strided_slice %2 {offsets = [0, 24], sizes = [8, 8], strides = [1, 1]} : vector<16x192xf32> to vector<8x8xf32>
    %67 = arith.truncf %66 : vector<8x8xf32> to vector<8x8xbf16>
    %68 = vector.extract_strided_slice %2 {offsets = [0, 88], sizes = [8, 8], strides = [1, 1]} : vector<16x192xf32> to vector<8x8xf32>
    %69 = arith.truncf %68 : vector<8x8xf32> to vector<8x8xbf16>
    %70 = vector.extract_strided_slice %2 {offsets = [0, 152], sizes = [8, 8], strides = [1, 1]} : vector<16x192xf32> to vector<8x8xf32>
    %71 = arith.truncf %70 : vector<8x8xf32> to vector<8x8xbf16>
    %cst_19 = arith.constant dense<0.000000e+00> : vector<8x8xf32>
    %72 = tpu.matmul %67, %69, %cst_19 {dimension_numbers = #tpu.dot_dimension_numbers<[1], [1], [0], [0], [0, 0, 1, 0], [], []>} : vector<8x8xbf16>, vector<8x8xbf16>, vector<8x8xf32> -> vector<8x8xf32>
    %cst_20 = arith.constant dense<0xFF800000> : vector<8xf32>
    %73 = vector.multi_reduction <maximumf>, %72, %cst_20 [1] : vector<8x8xf32> to vector<8xf32>
    %74 = vector.shape_cast %73 : vector<8xf32> to vector<8x1xf32>
    %75 = vector.broadcast %74 : vector<8x1xf32> to vector<8x8xf32>
    %76 = arith.subf %72, %75 : vector<8x8xf32>
    %77 = math.exp %76 : vector<8x8xf32>
    %cst_21 = arith.constant dense<0.000000e+00> : vector<8xf32>
    %78 = vector.multi_reduction <add>, %77, %cst_21 [1] : vector<8x8xf32> to vector<8xf32>
    %79 = vector.shape_cast %78 : vector<8xf32> to vector<8x1xf32>
    %80 = tpu.reciprocal %79 {approx = true} : vector<8x1xf32> -> vector<8x1xf32>
    %81 = vector.broadcast %80 : vector<8x1xf32> to vector<8x8xf32>
    %82 = arith.mulf %77, %81 : vector<8x8xf32>
    %83 = arith.truncf %82 : vector<8x8xf32> to vector<8x8xbf16>
    %cst_22 = arith.constant dense<0.000000e+00> : vector<8x8xf32>
    %84 = tpu.matmul %83, %71, %cst_22 {dimension_numbers = #tpu.dot_dimension_numbers<[1], [0], [0], [1], [0, 0, 1, 1], [], []>} : vector<8x8xbf16>, vector<8x8xbf16>, vector<8x8xf32> -> vector<8x8xf32>
    %85 = arith.truncf %84 : vector<8x8xf32> to vector<8x8xbf16>
    %c0_23 = arith.constant 0 : index
    %c24 = arith.constant 24 : index
    %86 = vector.load %arg6[%c0_23, %c24] : memref<16x64xbf16, #tpu.memory_space<vmem>>, vector<8x8xbf16>
    tpu.vector_store %arg6[%c0_23, %c24], %85 {strides = array<i32>} : memref<16x64xbf16, #tpu.memory_space<vmem>>, vector<8x8xbf16>,
    %87 = vector.extract_strided_slice %2 {offsets = [0, 32], sizes = [8, 8], strides = [1, 1]} : vector<16x192xf32> to vector<8x8xf32>
    %88 = arith.truncf %87 : vector<8x8xf32> to vector<8x8xbf16>
    %89 = vector.extract_strided_slice %2 {offsets = [0, 96], sizes = [8, 8], strides = [1, 1]} : vector<16x192xf32> to vector<8x8xf32>
    %90 = arith.truncf %89 : vector<8x8xf32> to vector<8x8xbf16>
    %91 = vector.extract_strided_slice %2 {offsets = [0, 160], sizes = [8, 8], strides = [1, 1]} : vector<16x192xf32> to vector<8x8xf32>
    %92 = arith.truncf %91 : vector<8x8xf32> to vector<8x8xbf16>
    %cst_24 = arith.constant dense<0.000000e+00> : vector<8x8xf32>
    %93 = tpu.matmul %88, %90, %cst_24 {dimension_numbers = #tpu.dot_dimension_numbers<[1], [1], [0], [0], [0, 0, 1, 0], [], []>} : vector<8x8xbf16>, vector<8x8xbf16>, vector<8x8xf32> -> vector<8x8xf32>
    %cst_25 = arith.constant dense<0xFF800000> : vector<8xf32>
    %94 = vector.multi_reduction <maximumf>, %93, %cst_25 [1] : vector<8x8xf32> to vector<8xf32>
    %95 = vector.shape_cast %94 : vector<8xf32> to vector<8x1xf32>
    %96 = vector.broadcast %95 : vector<8x1xf32> to vector<8x8xf32>
    %97 = arith.subf %93, %96 : vector<8x8xf32>
    %98 = math.exp %97 : vector<8x8xf32>
    %cst_26 = arith.constant dense<0.000000e+00> : vector<8xf32>
    %99 = vector.multi_reduction <add>, %98, %cst_26 [1] : vector<8x8xf32> to vector<8xf32>
    %100 = vector.shape_cast %99 : vector<8xf32> to vector<8x1xf32>
    %101 = tpu.reciprocal %100 {approx = true} : vector<8x1xf32> -> vector<8x1xf32>
    %102 = vector.broadcast %101 : vector<8x1xf32> to vector<8x8xf32>
    %103 = arith.mulf %98, %102 : vector<8x8xf32>
    %104 = arith.truncf %103 : vector<8x8xf32> to vector<8x8xbf16>
    %cst_27 = arith.constant dense<0.000000e+00> : vector<8x8xf32>
    %105 = tpu.matmul %104, %92, %cst_27 {dimension_numbers = #tpu.dot_dimension_numbers<[1], [0], [0], [1], [0, 0, 1, 1], [], []>} : vector<8x8xbf16>, vector<8x8xbf16>, vector<8x8xf32> -> vector<8x8xf32>
    %106 = arith.truncf %105 : vector<8x8xf32> to vector<8x8xbf16>
    %c0_28 = arith.constant 0 : index
    %c32 = arith.constant 32 : index
    %107 = vector.load %arg6[%c0_28, %c32] : memref<16x64xbf16, #tpu.memory_space<vmem>>, vector<8x8xbf16>
    tpu.vector_store %arg6[%c0_28, %c32], %106 {strides = array<i32>} : memref<16x64xbf16, #tpu.memory_space<vmem>>, vector<8x8xbf16>,
    %108 = vector.extract_strided_slice %2 {offsets = [0, 40], sizes = [8, 8], strides = [1, 1]} : vector<16x192xf32> to vector<8x8xf32>
    %109 = arith.truncf %108 : vector<8x8xf32> to vector<8x8xbf16>
    %110 = vector.extract_strided_slice %2 {offsets = [0, 104], sizes = [8, 8], strides = [1, 1]} : vector<16x192xf32> to vector<8x8xf32>
    %111 = arith.truncf %110 : vector<8x8xf32> to vector<8x8xbf16>
    %112 = vector.extract_strided_slice %2 {offsets = [0, 168], sizes = [8, 8], strides = [1, 1]} : vector<16x192xf32> to vector<8x8xf32>
    %113 = arith.truncf %112 : vector<8x8xf32> to vector<8x8xbf16>
    %cst_29 = arith.constant dense<0.000000e+00> : vector<8x8xf32>
    %114 = tpu.matmul %109, %111, %cst_29 {dimension_numbers = #tpu.dot_dimension_numbers<[1], [1], [0], [0], [0, 0, 1, 0], [], []>} : vector<8x8xbf16>, vector<8x8xbf16>, vector<8x8xf32> -> vector<8x8xf32>
    %cst_30 = arith.constant dense<0xFF800000> : vector<8xf32>
    %115 = vector.multi_reduction <maximumf>, %114, %cst_30 [1] : vector<8x8xf32> to vector<8xf32>
    %116 = vector.shape_cast %115 : vector<8xf32> to vector<8x1xf32>
    %117 = vector.broadcast %116 : vector<8x1xf32> to vector<8x8xf32>
    %118 = arith.subf %114, %117 : vector<8x8xf32>
    %119 = math.exp %118 : vector<8x8xf32>
    %cst_31 = arith.constant dense<0.000000e+00> : vector<8xf32>
    %120 = vector.multi_reduction <add>, %119, %cst_31 [1] : vector<8x8xf32> to vector<8xf32>
    %121 = vector.shape_cast %120 : vector<8xf32> to vector<8x1xf32>
    %122 = tpu.reciprocal %121 {approx = true} : vector<8x1xf32> -> vector<8x1xf32>
    %123 = vector.broadcast %122 : vector<8x1xf32> to vector<8x8xf32>
    %124 = arith.mulf %119, %123 : vector<8x8xf32>
    %125 = arith.truncf %124 : vector<8x8xf32> to vector<8x8xbf16>
    %cst_32 = arith.constant dense<0.000000e+00> : vector<8x8xf32>
    %126 = tpu.matmul %125, %113, %cst_32 {dimension_numbers = #tpu.dot_dimension_numbers<[1], [0], [0], [1], [0, 0, 1, 1], [], []>} : vector<8x8xbf16>, vector<8x8xbf16>, vector<8x8xf32> -> vector<8x8xf32>
    %127 = arith.truncf %126 : vector<8x8xf32> to vector<8x8xbf16>
    %c0_33 = arith.constant 0 : index
    %c40 = arith.constant 40 : index
    %128 = vector.load %arg6[%c0_33, %c40] : memref<16x64xbf16, #tpu.memory_space<vmem>>, vector<8x8xbf16>
    tpu.vector_store %arg6[%c0_33, %c40], %127 {strides = array<i32>} : memref<16x64xbf16, #tpu.memory_space<vmem>>, vector<8x8xbf16>,
    %129 = vector.extract_strided_slice %2 {offsets = [0, 48], sizes = [8, 8], strides = [1, 1]} : vector<16x192xf32> to vector<8x8xf32>
    %130 = arith.truncf %129 : vector<8x8xf32> to vector<8x8xbf16>
    %131 = vector.extract_strided_slice %2 {offsets = [0, 112], sizes = [8, 8], strides = [1, 1]} : vector<16x192xf32> to vector<8x8xf32>
    %132 = arith.truncf %131 : vector<8x8xf32> to vector<8x8xbf16>
    %133 = vector.extract_strided_slice %2 {offsets = [0, 176], sizes = [8, 8], strides = [1, 1]} : vector<16x192xf32> to vector<8x8xf32>
    %134 = arith.truncf %133 : vector<8x8xf32> to vector<8x8xbf16>
    %cst_34 = arith.constant dense<0.000000e+00> : vector<8x8xf32>
    %135 = tpu.matmul %130, %132, %cst_34 {dimension_numbers = #tpu.dot_dimension_numbers<[1], [1], [0], [0], [0, 0, 1, 0], [], []>} : vector<8x8xbf16>, vector<8x8xbf16>, vector<8x8xf32> -> vector<8x8xf32>
    %cst_35 = arith.constant dense<0xFF800000> : vector<8xf32>
    %136 = vector.multi_reduction <maximumf>, %135, %cst_35 [1] : vector<8x8xf32> to vector<8xf32>
    %137 = vector.shape_cast %136 : vector<8xf32> to vector<8x1xf32>
    %138 = vector.broadcast %137 : vector<8x1xf32> to vector<8x8xf32>
    %139 = arith.subf %135, %138 : vector<8x8xf32>
    %140 = math.exp %139 : vector<8x8xf32>
    %cst_36 = arith.constant dense<0.000000e+00> : vector<8xf32>
    %141 = vector.multi_reduction <add>, %140, %cst_36 [1] : vector<8x8xf32> to vector<8xf32>
    %142 = vector.shape_cast %141 : vector<8xf32> to vector<8x1xf32>
    %143 = tpu.reciprocal %142 {approx = true} : vector<8x1xf32> -> vector<8x1xf32>
    %144 = vector.broadcast %143 : vector<8x1xf32> to vector<8x8xf32>
    %145 = arith.mulf %140, %144 : vector<8x8xf32>
    %146 = arith.truncf %145 : vector<8x8xf32> to vector<8x8xbf16>
    %cst_37 = arith.constant dense<0.000000e+00> : vector<8x8xf32>
    %147 = tpu.matmul %146, %134, %cst_37 {dimension_numbers = #tpu.dot_dimension_numbers<[1], [0], [0], [1], [0, 0, 1, 1], [], []>} : vector<8x8xbf16>, vector<8x8xbf16>, vector<8x8xf32> -> vector<8x8xf32>
    %148 = arith.truncf %147 : vector<8x8xf32> to vector<8x8xbf16>
    %c0_38 = arith.constant 0 : index
    %c48 = arith.constant 48 : index
    %149 = vector.load %arg6[%c0_38, %c48] : memref<16x64xbf16, #tpu.memory_space<vmem>>, vector<8x8xbf16>
    tpu.vector_store %arg6[%c0_38, %c48], %148 {strides = array<i32>} : memref<16x64xbf16, #tpu.memory_space<vmem>>, vector<8x8xbf16>,
    %150 = vector.extract_strided_slice %2 {offsets = [0, 56], sizes = [8, 8], strides = [1, 1]} : vector<16x192xf32> to vector<8x8xf32>
    %151 = arith.truncf %150 : vector<8x8xf32> to vector<8x8xbf16>
    %152 = vector.extract_strided_slice %2 {offsets = [0, 120], sizes = [8, 8], strides = [1, 1]} : vector<16x192xf32> to vector<8x8xf32>
    %153 = arith.truncf %152 : vector<8x8xf32> to vector<8x8xbf16>
    %154 = vector.extract_strided_slice %2 {offsets = [0, 184], sizes = [8, 8], strides = [1, 1]} : vector<16x192xf32> to vector<8x8xf32>
    %155 = arith.truncf %154 : vector<8x8xf32> to vector<8x8xbf16>
    %cst_39 = arith.constant dense<0.000000e+00> : vector<8x8xf32>
    %156 = tpu.matmul %151, %153, %cst_39 {dimension_numbers = #tpu.dot_dimension_numbers<[1], [1], [0], [0], [0, 0, 1, 0], [], []>} : vector<8x8xbf16>, vector<8x8xbf16>, vector<8x8xf32> -> vector<8x8xf32>
    %cst_40 = arith.constant dense<0xFF800000> : vector<8xf32>
    %157 = vector.multi_reduction <maximumf>, %156, %cst_40 [1] : vector<8x8xf32> to vector<8xf32>
    %158 = vector.shape_cast %157 : vector<8xf32> to vector<8x1xf32>
    %159 = vector.broadcast %158 : vector<8x1xf32> to vector<8x8xf32>
    %160 = arith.subf %156, %159 : vector<8x8xf32>
    %161 = math.exp %160 : vector<8x8xf32>
    %cst_41 = arith.constant dense<0.000000e+00> : vector<8xf32>
    %162 = vector.multi_reduction <add>, %161, %cst_41 [1] : vector<8x8xf32> to vector<8xf32>
    %163 = vector.shape_cast %162 : vector<8xf32> to vector<8x1xf32>
    %164 = tpu.reciprocal %163 {approx = true} : vector<8x1xf32> -> vector<8x1xf32>
    %165 = vector.broadcast %164 : vector<8x1xf32> to vector<8x8xf32>
    %166 = arith.mulf %161, %165 : vector<8x8xf32>
    %167 = arith.truncf %166 : vector<8x8xf32> to vector<8x8xbf16>
    %cst_42 = arith.constant dense<0.000000e+00> : vector<8x8xf32>
    %168 = tpu.matmul %167, %155, %cst_42 {dimension_numbers = #tpu.dot_dimension_numbers<[1], [0], [0], [1], [0, 0, 1, 1], [], []>} : vector<8x8xbf16>, vector<8x8xbf16>, vector<8x8xf32> -> vector<8x8xf32>
    %169 = arith.truncf %168 : vector<8x8xf32> to vector<8x8xbf16>
    %c0_43 = arith.constant 0 : index
    %c56 = arith.constant 56 : index
    %170 = vector.load %arg6[%c0_43, %c56] : memref<16x64xbf16, #tpu.memory_space<vmem>>, vector<8x8xbf16>
    tpu.vector_store %arg6[%c0_43, %c56], %169 {strides = array<i32>} : memref<16x64xbf16, #tpu.memory_space<vmem>>, vector<8x8xbf16>,
    %171 = vector.extract_strided_slice %2 {offsets = [8, 0], sizes = [8, 8], strides = [1, 1]} : vector<16x192xf32> to vector<8x8xf32>
    %172 = arith.truncf %171 : vector<8x8xf32> to vector<8x8xbf16>
    %173 = vector.extract_strided_slice %2 {offsets = [8, 64], sizes = [8, 8], strides = [1, 1]} : vector<16x192xf32> to vector<8x8xf32>
    %174 = arith.truncf %173 : vector<8x8xf32> to vector<8x8xbf16>
    %175 = vector.extract_strided_slice %2 {offsets = [8, 128], sizes = [8, 8], strides = [1, 1]} : vector<16x192xf32> to vector<8x8xf32>
    %176 = arith.truncf %175 : vector<8x8xf32> to vector<8x8xbf16>
    %cst_44 = arith.constant dense<0.000000e+00> : vector<8x8xf32>
    %177 = tpu.matmul %172, %174, %cst_44 {dimension_numbers = #tpu.dot_dimension_numbers<[1], [1], [0], [0], [0, 0, 1, 0], [], []>} : vector<8x8xbf16>, vector<8x8xbf16>, vector<8x8xf32> -> vector<8x8xf32>
    %cst_45 = arith.constant dense<0xFF800000> : vector<8xf32>
    %178 = vector.multi_reduction <maximumf>, %177, %cst_45 [1] : vector<8x8xf32> to vector<8xf32>
    %179 = vector.shape_cast %178 : vector<8xf32> to vector<8x1xf32>
    %180 = vector.broadcast %179 : vector<8x1xf32> to vector<8x8xf32>
    %181 = arith.subf %177, %180 : vector<8x8xf32>
    %182 = math.exp %181 : vector<8x8xf32>
    %cst_46 = arith.constant dense<0.000000e+00> : vector<8xf32>
    %183 = vector.multi_reduction <add>, %182, %cst_46 [1] : vector<8x8xf32> to vector<8xf32>
    %184 = vector.shape_cast %183 : vector<8xf32> to vector<8x1xf32>
    %185 = tpu.reciprocal %184 {approx = true} : vector<8x1xf32> -> vector<8x1xf32>
    %186 = vector.broadcast %185 : vector<8x1xf32> to vector<8x8xf32>
    %187 = arith.mulf %182, %186 : vector<8x8xf32>
    %188 = arith.truncf %187 : vector<8x8xf32> to vector<8x8xbf16>
    %cst_47 = arith.constant dense<0.000000e+00> : vector<8x8xf32>
    %189 = tpu.matmul %188, %176, %cst_47 {dimension_numbers = #tpu.dot_dimension_numbers<[1], [0], [0], [1], [0, 0, 1, 1], [], []>} : vector<8x8xbf16>, vector<8x8xbf16>, vector<8x8xf32> -> vector<8x8xf32>
    %190 = arith.truncf %189 : vector<8x8xf32> to vector<8x8xbf16>
    %c8_48 = arith.constant 8 : index
    %c0_49 = arith.constant 0 : index
    %191 = vector.load %arg6[%c8_48, %c0_49] : memref<16x64xbf16, #tpu.memory_space<vmem>>, vector<8x8xbf16>
    tpu.vector_store %arg6[%c8_48, %c0_49], %190 {strides = array<i32>} : memref<16x64xbf16, #tpu.memory_space<vmem>>, vector<8x8xbf16>,
    %192 = vector.extract_strided_slice %2 {offsets = [8, 8], sizes = [8, 8], strides = [1, 1]} : vector<16x192xf32> to vector<8x8xf32>
    %193 = arith.truncf %192 : vector<8x8xf32> to vector<8x8xbf16>
    %194 = vector.extract_strided_slice %2 {offsets = [8, 72], sizes = [8, 8], strides = [1, 1]} : vector<16x192xf32> to vector<8x8xf32>
    %195 = arith.truncf %194 : vector<8x8xf32> to vector<8x8xbf16>
    %196 = vector.extract_strided_slice %2 {offsets = [8, 136], sizes = [8, 8], strides = [1, 1]} : vector<16x192xf32> to vector<8x8xf32>
    %197 = arith.truncf %196 : vector<8x8xf32> to vector<8x8xbf16>
    %cst_50 = arith.constant dense<0.000000e+00> : vector<8x8xf32>
    %198 = tpu.matmul %193, %195, %cst_50 {dimension_numbers = #tpu.dot_dimension_numbers<[1], [1], [0], [0], [0, 0, 1, 0], [], []>} : vector<8x8xbf16>, vector<8x8xbf16>, vector<8x8xf32> -> vector<8x8xf32>
    %cst_51 = arith.constant dense<0xFF800000> : vector<8xf32>
    %199 = vector.multi_reduction <maximumf>, %198, %cst_51 [1] : vector<8x8xf32> to vector<8xf32>
    %200 = vector.shape_cast %199 : vector<8xf32> to vector<8x1xf32>
    %201 = vector.broadcast %200 : vector<8x1xf32> to vector<8x8xf32>
    %202 = arith.subf %198, %201 : vector<8x8xf32>
    %203 = math.exp %202 : vector<8x8xf32>
    %cst_52 = arith.constant dense<0.000000e+00> : vector<8xf32>
    %204 = vector.multi_reduction <add>, %203, %cst_52 [1] : vector<8x8xf32> to vector<8xf32>
    %205 = vector.shape_cast %204 : vector<8xf32> to vector<8x1xf32>
    %206 = tpu.reciprocal %205 {approx = true} : vector<8x1xf32> -> vector<8x1xf32>
    %207 = vector.broadcast %206 : vector<8x1xf32> to vector<8x8xf32>
    %208 = arith.mulf %203, %207 : vector<8x8xf32>
    %209 = arith.truncf %208 : vector<8x8xf32> to vector<8x8xbf16>
    %cst_53 = arith.constant dense<0.000000e+00> : vector<8x8xf32>
    %210 = tpu.matmul %209, %197, %cst_53 {dimension_numbers = #tpu.dot_dimension_numbers<[1], [0], [0], [1], [0, 0, 1, 1], [], []>} : vector<8x8xbf16>, vector<8x8xbf16>, vector<8x8xf32> -> vector<8x8xf32>
    %211 = arith.truncf %210 : vector<8x8xf32> to vector<8x8xbf16>
    %c8_54 = arith.constant 8 : index
    %c8_55 = arith.constant 8 : index
    %212 = vector.load %arg6[%c8_54, %c8_55] : memref<16x64xbf16, #tpu.memory_space<vmem>>, vector<8x8xbf16>
    tpu.vector_store %arg6[%c8_54, %c8_55], %211 {strides = array<i32>} : memref<16x64xbf16, #tpu.memory_space<vmem>>, vector<8x8xbf16>,
    %213 = vector.extract_strided_slice %2 {offsets = [8, 16], sizes = [8, 8], strides = [1, 1]} : vector<16x192xf32> to vector<8x8xf32>
    %214 = arith.truncf %213 : vector<8x8xf32> to vector<8x8xbf16>
    %215 = vector.extract_strided_slice %2 {offsets = [8, 80], sizes = [8, 8], strides = [1, 1]} : vector<16x192xf32> to vector<8x8xf32>
    %216 = arith.truncf %215 : vector<8x8xf32> to vector<8x8xbf16>
    %217 = vector.extract_strided_slice %2 {offsets = [8, 144], sizes = [8, 8], strides = [1, 1]} : vector<16x192xf32> to vector<8x8xf32>
    %218 = arith.truncf %217 : vector<8x8xf32> to vector<8x8xbf16>
    %cst_56 = arith.constant dense<0.000000e+00> : vector<8x8xf32>
    %219 = tpu.matmul %214, %216, %cst_56 {dimension_numbers = #tpu.dot_dimension_numbers<[1], [1], [0], [0], [0, 0, 1, 0], [], []>} : vector<8x8xbf16>, vector<8x8xbf16>, vector<8x8xf32> -> vector<8x8xf32>
    %cst_57 = arith.constant dense<0xFF800000> : vector<8xf32>
    %220 = vector.multi_reduction <maximumf>, %219, %cst_57 [1] : vector<8x8xf32> to vector<8xf32>
    %221 = vector.shape_cast %220 : vector<8xf32> to vector<8x1xf32>
    %222 = vector.broadcast %221 : vector<8x1xf32> to vector<8x8xf32>
    %223 = arith.subf %219, %222 : vector<8x8xf32>
    %224 = math.exp %223 : vector<8x8xf32>
    %cst_58 = arith.constant dense<0.000000e+00> : vector<8xf32>
    %225 = vector.multi_reduction <add>, %224, %cst_58 [1] : vector<8x8xf32> to vector<8xf32>
    %226 = vector.shape_cast %225 : vector<8xf32> to vector<8x1xf32>
    %227 = tpu.reciprocal %226 {approx = true} : vector<8x1xf32> -> vector<8x1xf32>
    %228 = vector.broadcast %227 : vector<8x1xf32> to vector<8x8xf32>
    %229 = arith.mulf %224, %228 : vector<8x8xf32>
    %230 = arith.truncf %229 : vector<8x8xf32> to vector<8x8xbf16>
    %cst_59 = arith.constant dense<0.000000e+00> : vector<8x8xf32>
    %231 = tpu.matmul %230, %218, %cst_59 {dimension_numbers = #tpu.dot_dimension_numbers<[1], [0], [0], [1], [0, 0, 1, 1], [], []>} : vector<8x8xbf16>, vector<8x8xbf16>, vector<8x8xf32> -> vector<8x8xf32>
    %232 = arith.truncf %231 : vector<8x8xf32> to vector<8x8xbf16>
    %c8_60 = arith.constant 8 : index
    %c16_61 = arith.constant 16 : index
    %233 = vector.load %arg6[%c8_60, %c16_61] : memref<16x64xbf16, #tpu.memory_space<vmem>>, vector<8x8xbf16>
    tpu.vector_store %arg6[%c8_60, %c16_61], %232 {strides = array<i32>} : memref<16x64xbf16, #tpu.memory_space<vmem>>, vector<8x8xbf16>,
    %234 = vector.extract_strided_slice %2 {offsets = [8, 24], sizes = [8, 8], strides = [1, 1]} : vector<16x192xf32> to vector<8x8xf32>
    %235 = arith.truncf %234 : vector<8x8xf32> to vector<8x8xbf16>
    %236 = vector.extract_strided_slice %2 {offsets = [8, 88], sizes = [8, 8], strides = [1, 1]} : vector<16x192xf32> to vector<8x8xf32>
    %237 = arith.truncf %236 : vector<8x8xf32> to vector<8x8xbf16>
    %238 = vector.extract_strided_slice %2 {offsets = [8, 152], sizes = [8, 8], strides = [1, 1]} : vector<16x192xf32> to vector<8x8xf32>
    %239 = arith.truncf %238 : vector<8x8xf32> to vector<8x8xbf16>
    %cst_62 = arith.constant dense<0.000000e+00> : vector<8x8xf32>
    %240 = tpu.matmul %235, %237, %cst_62 {dimension_numbers = #tpu.dot_dimension_numbers<[1], [1], [0], [0], [0, 0, 1, 0], [], []>} : vector<8x8xbf16>, vector<8x8xbf16>, vector<8x8xf32> -> vector<8x8xf32>
    %cst_63 = arith.constant dense<0xFF800000> : vector<8xf32>
    %241 = vector.multi_reduction <maximumf>, %240, %cst_63 [1] : vector<8x8xf32> to vector<8xf32>
    %242 = vector.shape_cast %241 : vector<8xf32> to vector<8x1xf32>
    %243 = vector.broadcast %242 : vector<8x1xf32> to vector<8x8xf32>
    %244 = arith.subf %240, %243 : vector<8x8xf32>
    %245 = math.exp %244 : vector<8x8xf32>
    %cst_64 = arith.constant dense<0.000000e+00> : vector<8xf32>
    %246 = vector.multi_reduction <add>, %245, %cst_64 [1] : vector<8x8xf32> to vector<8xf32>
    %247 = vector.shape_cast %246 : vector<8xf32> to vector<8x1xf32>
    %248 = tpu.reciprocal %247 {approx = true} : vector<8x1xf32> -> vector<8x1xf32>
    %249 = vector.broadcast %248 : vector<8x1xf32> to vector<8x8xf32>
    %250 = arith.mulf %245, %249 : vector<8x8xf32>
    %251 = arith.truncf %250 : vector<8x8xf32> to vector<8x8xbf16>
    %cst_65 = arith.constant dense<0.000000e+00> : vector<8x8xf32>
    %252 = tpu.matmul %251, %239, %cst_65 {dimension_numbers = #tpu.dot_dimension_numbers<[1], [0], [0], [1], [0, 0, 1, 1], [], []>} : vector<8x8xbf16>, vector<8x8xbf16>, vector<8x8xf32> -> vector<8x8xf32>
    %253 = arith.truncf %252 : vector<8x8xf32> to vector<8x8xbf16>
    %c8_66 = arith.constant 8 : index
    %c24_67 = arith.constant 24 : index
    %254 = vector.load %arg6[%c8_66, %c24_67] : memref<16x64xbf16, #tpu.memory_space<vmem>>, vector<8x8xbf16>
    tpu.vector_store %arg6[%c8_66, %c24_67], %253 {strides = array<i32>} : memref<16x64xbf16, #tpu.memory_space<vmem>>, vector<8x8xbf16>,
    %255 = vector.extract_strided_slice %2 {offsets = [8, 32], sizes = [8, 8], strides = [1, 1]} : vector<16x192xf32> to vector<8x8xf32>
    %256 = arith.truncf %255 : vector<8x8xf32> to vector<8x8xbf16>
    %257 = vector.extract_strided_slice %2 {offsets = [8, 96], sizes = [8, 8], strides = [1, 1]} : vector<16x192xf32> to vector<8x8xf32>
    %258 = arith.truncf %257 : vector<8x8xf32> to vector<8x8xbf16>
    %259 = vector.extract_strided_slice %2 {offsets = [8, 160], sizes = [8, 8], strides = [1, 1]} : vector<16x192xf32> to vector<8x8xf32>
    %260 = arith.truncf %259 : vector<8x8xf32> to vector<8x8xbf16>
    %cst_68 = arith.constant dense<0.000000e+00> : vector<8x8xf32>
    %261 = tpu.matmul %256, %258, %cst_68 {dimension_numbers = #tpu.dot_dimension_numbers<[1], [1], [0], [0], [0, 0, 1, 0], [], []>} : vector<8x8xbf16>, vector<8x8xbf16>, vector<8x8xf32> -> vector<8x8xf32>
    %cst_69 = arith.constant dense<0xFF800000> : vector<8xf32>
    %262 = vector.multi_reduction <maximumf>, %261, %cst_69 [1] : vector<8x8xf32> to vector<8xf32>
    %263 = vector.shape_cast %262 : vector<8xf32> to vector<8x1xf32>
    %264 = vector.broadcast %263 : vector<8x1xf32> to vector<8x8xf32>
    %265 = arith.subf %261, %264 : vector<8x8xf32>
    %266 = math.exp %265 : vector<8x8xf32>
    %cst_70 = arith.constant dense<0.000000e+00> : vector<8xf32>
    %267 = vector.multi_reduction <add>, %266, %cst_70 [1] : vector<8x8xf32> to vector<8xf32>
    %268 = vector.shape_cast %267 : vector<8xf32> to vector<8x1xf32>
    %269 = tpu.reciprocal %268 {approx = true} : vector<8x1xf32> -> vector<8x1xf32>
    %270 = vector.broadcast %269 : vector<8x1xf32> to vector<8x8xf32>
    %271 = arith.mulf %266, %270 : vector<8x8xf32>
    %272 = arith.truncf %271 : vector<8x8xf32> to vector<8x8xbf16>
    %cst_71 = arith.constant dense<0.000000e+00> : vector<8x8xf32>
    %273 = tpu.matmul %272, %260, %cst_71 {dimension_numbers = #tpu.dot_dimension_numbers<[1], [0], [0], [1], [0, 0, 1, 1], [], []>} : vector<8x8xbf16>, vector<8x8xbf16>, vector<8x8xf32> -> vector<8x8xf32>
    %274 = arith.truncf %273 : vector<8x8xf32> to vector<8x8xbf16>
    %c8_72 = arith.constant 8 : index
    %c32_73 = arith.constant 32 : index
    %275 = vector.load %arg6[%c8_72, %c32_73] : memref<16x64xbf16, #tpu.memory_space<vmem>>, vector<8x8xbf16>
    tpu.vector_store %arg6[%c8_72, %c32_73], %274 {strides = array<i32>} : memref<16x64xbf16, #tpu.memory_space<vmem>>, vector<8x8xbf16>,
    %276 = vector.extract_strided_slice %2 {offsets = [8, 40], sizes = [8, 8], strides = [1, 1]} : vector<16x192xf32> to vector<8x8xf32>
    %277 = arith.truncf %276 : vector<8x8xf32> to vector<8x8xbf16>
    %278 = vector.extract_strided_slice %2 {offsets = [8, 104], sizes = [8, 8], strides = [1, 1]} : vector<16x192xf32> to vector<8x8xf32>
    %279 = arith.truncf %278 : vector<8x8xf32> to vector<8x8xbf16>
    %280 = vector.extract_strided_slice %2 {offsets = [8, 168], sizes = [8, 8], strides = [1, 1]} : vector<16x192xf32> to vector<8x8xf32>
    %281 = arith.truncf %280 : vector<8x8xf32> to vector<8x8xbf16>
    %cst_74 = arith.constant dense<0.000000e+00> : vector<8x8xf32>
    %282 = tpu.matmul %277, %279, %cst_74 {dimension_numbers = #tpu.dot_dimension_numbers<[1], [1], [0], [0], [0, 0, 1, 0], [], []>} : vector<8x8xbf16>, vector<8x8xbf16>, vector<8x8xf32> -> vector<8x8xf32>
    %cst_75 = arith.constant dense<0xFF800000> : vector<8xf32>
    %283 = vector.multi_reduction <maximumf>, %282, %cst_75 [1] : vector<8x8xf32> to vector<8xf32>
    %284 = vector.shape_cast %283 : vector<8xf32> to vector<8x1xf32>
    %285 = vector.broadcast %284 : vector<8x1xf32> to vector<8x8xf32>
    %286 = arith.subf %282, %285 : vector<8x8xf32>
    %287 = math.exp %286 : vector<8x8xf32>
    %cst_76 = arith.constant dense<0.000000e+00> : vector<8xf32>
    %288 = vector.multi_reduction <add>, %287, %cst_76 [1] : vector<8x8xf32> to vector<8xf32>
    %289 = vector.shape_cast %288 : vector<8xf32> to vector<8x1xf32>
    %290 = tpu.reciprocal %289 {approx = true} : vector<8x1xf32> -> vector<8x1xf32>
    %291 = vector.broadcast %290 : vector<8x1xf32> to vector<8x8xf32>
    %292 = arith.mulf %287, %291 : vector<8x8xf32>
    %293 = arith.truncf %292 : vector<8x8xf32> to vector<8x8xbf16>
    %cst_77 = arith.constant dense<0.000000e+00> : vector<8x8xf32>
    %294 = tpu.matmul %293, %281, %cst_77 {dimension_numbers = #tpu.dot_dimension_numbers<[1], [0], [0], [1], [0, 0, 1, 1], [], []>} : vector<8x8xbf16>, vector<8x8xbf16>, vector<8x8xf32> -> vector<8x8xf32>
    %295 = arith.truncf %294 : vector<8x8xf32> to vector<8x8xbf16>
    %c8_78 = arith.constant 8 : index
    %c40_79 = arith.constant 40 : index
    %296 = vector.load %arg6[%c8_78, %c40_79] : memref<16x64xbf16, #tpu.memory_space<vmem>>, vector<8x8xbf16>
    tpu.vector_store %arg6[%c8_78, %c40_79], %295 {strides = array<i32>} : memref<16x64xbf16, #tpu.memory_space<vmem>>, vector<8x8xbf16>,
    %297 = vector.extract_strided_slice %2 {offsets = [8, 48], sizes = [8, 8], strides = [1, 1]} : vector<16x192xf32> to vector<8x8xf32>
    %298 = arith.truncf %297 : vector<8x8xf32> to vector<8x8xbf16>
    %299 = vector.extract_strided_slice %2 {offsets = [8, 112], sizes = [8, 8], strides = [1, 1]} : vector<16x192xf32> to vector<8x8xf32>
    %300 = arith.truncf %299 : vector<8x8xf32> to vector<8x8xbf16>
    %301 = vector.extract_strided_slice %2 {offsets = [8, 176], sizes = [8, 8], strides = [1, 1]} : vector<16x192xf32> to vector<8x8xf32>
    %302 = arith.truncf %301 : vector<8x8xf32> to vector<8x8xbf16>
    %cst_80 = arith.constant dense<0.000000e+00> : vector<8x8xf32>
    %303 = tpu.matmul %298, %300, %cst_80 {dimension_numbers = #tpu.dot_dimension_numbers<[1], [1], [0], [0], [0, 0, 1, 0], [], []>} : vector<8x8xbf16>, vector<8x8xbf16>, vector<8x8xf32> -> vector<8x8xf32>
    %cst_81 = arith.constant dense<0xFF800000> : vector<8xf32>
    %304 = vector.multi_reduction <maximumf>, %303, %cst_81 [1] : vector<8x8xf32> to vector<8xf32>
    %305 = vector.shape_cast %304 : vector<8xf32> to vector<8x1xf32>
    %306 = vector.broadcast %305 : vector<8x1xf32> to vector<8x8xf32>
    %307 = arith.subf %303, %306 : vector<8x8xf32>
    %308 = math.exp %307 : vector<8x8xf32>
    %cst_82 = arith.constant dense<0.000000e+00> : vector<8xf32>
    %309 = vector.multi_reduction <add>, %308, %cst_82 [1] : vector<8x8xf32> to vector<8xf32>
    %310 = vector.shape_cast %309 : vector<8xf32> to vector<8x1xf32>
    %311 = tpu.reciprocal %310 {approx = true} : vector<8x1xf32> -> vector<8x1xf32>
    %312 = vector.broadcast %311 : vector<8x1xf32> to vector<8x8xf32>
    %313 = arith.mulf %308, %312 : vector<8x8xf32>
    %314 = arith.truncf %313 : vector<8x8xf32> to vector<8x8xbf16>
    %cst_83 = arith.constant dense<0.000000e+00> : vector<8x8xf32>
    %315 = tpu.matmul %314, %302, %cst_83 {dimension_numbers = #tpu.dot_dimension_numbers<[1], [0], [0], [1], [0, 0, 1, 1], [], []>} : vector<8x8xbf16>, vector<8x8xbf16>, vector<8x8xf32> -> vector<8x8xf32>
    %316 = arith.truncf %315 : vector<8x8xf32> to vector<8x8xbf16>
    %c8_84 = arith.constant 8 : index
    %c48_85 = arith.constant 48 : index
    %317 = vector.load %arg6[%c8_84, %c48_85] : memref<16x64xbf16, #tpu.memory_space<vmem>>, vector<8x8xbf16>
    tpu.vector_store %arg6[%c8_84, %c48_85], %316 {strides = array<i32>} : memref<16x64xbf16, #tpu.memory_space<vmem>>, vector<8x8xbf16>,
    %318 = vector.extract_strided_slice %2 {offsets = [8, 56], sizes = [8, 8], strides = [1, 1]} : vector<16x192xf32> to vector<8x8xf32>
    %319 = arith.truncf %318 : vector<8x8xf32> to vector<8x8xbf16>
    %320 = vector.extract_strided_slice %2 {offsets = [8, 120], sizes = [8, 8], strides = [1, 1]} : vector<16x192xf32> to vector<8x8xf32>
    %321 = arith.truncf %320 : vector<8x8xf32> to vector<8x8xbf16>
    %322 = vector.extract_strided_slice %2 {offsets = [8, 184], sizes = [8, 8], strides = [1, 1]} : vector<16x192xf32> to vector<8x8xf32>
    %323 = arith.truncf %322 : vector<8x8xf32> to vector<8x8xbf16>
    %cst_86 = arith.constant dense<0.000000e+00> : vector<8x8xf32>
    %324 = tpu.matmul %319, %321, %cst_86 {dimension_numbers = #tpu.dot_dimension_numbers<[1], [1], [0], [0], [0, 0, 1, 0], [], []>} : vector<8x8xbf16>, vector<8x8xbf16>, vector<8x8xf32> -> vector<8x8xf32>
    %cst_87 = arith.constant dense<0xFF800000> : vector<8xf32>
    %325 = vector.multi_reduction <maximumf>, %324, %cst_87 [1] : vector<8x8xf32> to vector<8xf32>
    %326 = vector.shape_cast %325 : vector<8xf32> to vector<8x1xf32>
    %327 = vector.broadcast %326 : vector<8x1xf32> to vector<8x8xf32>
    %328 = arith.subf %324, %327 : vector<8x8xf32>
    %329 = math.exp %328 : vector<8x8xf32>
    %cst_88 = arith.constant dense<0.000000e+00> : vector<8xf32>
    %330 = vector.multi_reduction <add>, %329, %cst_88 [1] : vector<8x8xf32> to vector<8xf32>
    %331 = vector.shape_cast %330 : vector<8xf32> to vector<8x1xf32>
    %332 = tpu.reciprocal %331 {approx = true} : vector<8x1xf32> -> vector<8x1xf32>
    %333 = vector.broadcast %332 : vector<8x1xf32> to vector<8x8xf32>
    %334 = arith.mulf %329, %333 : vector<8x8xf32>
    %335 = arith.truncf %334 : vector<8x8xf32> to vector<8x8xbf16>
    %cst_89 = arith.constant dense<0.000000e+00> : vector<8x8xf32>
    %336 = tpu.matmul %335, %323, %cst_89 {dimension_numbers = #tpu.dot_dimension_numbers<[1], [0], [0], [1], [0, 0, 1, 1], [], []>} : vector<8x8xbf16>, vector<8x8xbf16>, vector<8x8xf32> -> vector<8x8xf32>
    %337 = arith.truncf %336 : vector<8x8xf32> to vector<8x8xbf16>
    %c8_90 = arith.constant 8 : index
    %c56_91 = arith.constant 56 : index
    %338 = vector.load %arg6[%c8_90, %c56_91] : memref<16x64xbf16, #tpu.memory_space<vmem>>, vector<8x8xbf16>
    tpu.vector_store %arg6[%c8_90, %c56_91], %337 {strides = array<i32>} : memref<16x64xbf16, #tpu.memory_space<vmem>>, vector<8x8xbf16>,
    %c0_92 = arith.constant 0 : index
    %c0_93 = arith.constant 0 : index
    %339 = vector.load %arg6[%c0_92, %c0_93] : memref<16x64xbf16, #tpu.memory_space<vmem>>, vector<16x64xbf16>
    %c0_94 = arith.constant 0 : index
    %c0_95 = arith.constant 0 : index
    %340 = vector.load %arg3[%c0_94, %c0_95] : memref<64x64xbf16, #tpu.memory_space<vmem>>, vector<64x64xbf16>
    %cst_96 = arith.constant dense<0.000000e+00> : vector<16x64xf32>
    %341 = tpu.matmul %339, %340, %cst_96 {dimension_numbers = #tpu.dot_dimension_numbers<[1], [0], [0], [1], [0, 0, 1, 1], [], []>} : vector<16x64xbf16>, vector<64x64xbf16>, vector<16x64xf32> -> vector<16x64xf32>
    %c0_97 = arith.constant 0 : index
    %c0_98 = arith.constant 0 : index
    %342 = vector.load %arg4[%c0_97, %c0_98] : memref<1x64xf32, #tpu.memory_space<vmem>>, vector<1x64xf32>
    %343 = vector.broadcast %342 : vector<1x64xf32> to vector<16x64xf32>
    %344 = arith.addf %341, %343 : vector<16x64xf32>
    %c0_99 = arith.constant 0 : index
    %c0_100 = arith.constant 0 : index
    %345 = vector.load %arg5[%c0_99, %c0_100] : memref<16x64xf32, #tpu.memory_space<vmem>>, vector<16x64xf32>
    tpu.vector_store %arg5[%c0_99, %c0_100], %344 {strides = array<i32>} : memref<16x64xf32, #tpu.memory_space<vmem>>, vector<16x64xf32>,
    return
  }
  func.func @transform_0(%arg0: i32) -> (i32, i32) {
    %c0_i32 = arith.constant 0 : i32
    %c0_i32_0 = arith.constant 0 : i32
    %c0_i32_1 = arith.constant 0 : i32
    return %c0_i32, %c0_i32_0 : i32, i32
  }
  func.func @transform_1(%arg0: i32) -> (i32, i32) {
    %c0_i32 = arith.constant 0 : i32
    %c0_i32_0 = arith.constant 0 : i32
    %c0_i32_1 = arith.constant 0 : i32
    return %c0_i32, %c0_i32_0 : i32, i32
  }
  func.func @transform_2(%arg0: i32) -> (i32, i32) {
    %c0_i32 = arith.constant 0 : i32
    %c0_i32_0 = arith.constant 0 : i32
    %c0_i32_1 = arith.constant 0 : i32
    return %c0_i32, %c0_i32_0 : i32, i32
  }
  func.func @transform_3(%arg0: i32) -> (i32, i32) {
    %c0_i32 = arith.constant 0 : i32
    %c0_i32_0 = arith.constant 0 : i32
    %c0_i32_1 = arith.constant 0 : i32
    return %c0_i32, %c0_i32_0 : i32, i32
  }
  func.func @transform_4(%arg0: i32) -> (i32, i32) {
    %c0_i32 = arith.constant 0 : i32
    %c0_i32_0 = arith.constant 0 : i32
    %c0_i32_1 = arith.constant 0 : i32
    return %c0_i32, %c0_i32_0 : i32, i32
  }
}

</mosaic_0001>

<bundles_post_ra>
// kernel: tpu_custom_call.1
= control target key start
LH: loop header
LB: loop body
LE: loop exit
PB: predicated region body
PF: predicated region fallthrough
CT: control target
= control target key end

     0   :  { %9 = vsyncpa [#allocation4], 0  ;;  %s1959_s0 = inlined_call_operand.hbm [shape: bf16[16,64], index: 0, kind: input, shape index: {}]   ;;  %s1960_s1 = inlined_call_operand.hbm [shape: bf16[64,192], index: 1, kind: input, shape index: {}]   ;;  %s1961_s2 = inlined_call_operand.hbm [shape: bf16[64,64], index: 2, kind: input, shape index: {}]   ;;  %s1962_s3 = inlined_call_operand.vmem [shape: f32[1,64], index: 3, kind: input, shape index: {}]   ;;  %s1963_s4 = inlined_call_operand.hbm [shape: f32[16,64], index: 4, kind: output, shape index: {}]  }
   0x1   :  { %10 = vsyncpa [#allocation7], 0  ;;  %s29_s17 = sshll.u32 %s1960_s1, 4  ;;  %s30_s17 = int_to_ptr.hbm [resolvable:$true] %s29_s17 }
   0x2   :  { %11 = vsyncpa [#allocation5], 0  ;;  %s1522_s18 = smov [#allocation6]   ;;  %s16_s22 = sshll.u32 %s1959_s0, 4  ;;  %s17_s22 = int_to_ptr.hbm [resolvable:$true] %s16_s22 }
   0x3   :  { %s31_s19 = sshll.u32 %s1522_s18, 4  ;;  %s1523_s23 = smov 128   ;;  %s32_s19 = int_to_ptr.vmem [resolvable:$true] %s31_s19 }
   0x4   :  { %s1524_s24 = smov 8   ;;  %s1525_s25 = smov [#allocation3]  }
   0x5   :  { %37 = dma.hbm_to_vmem [thread:$0]  %s30_s17, 1024, %s32_s19, [#allocation7], %s1523_s23, %s1523_s23, %s1524_s24  }
   0x6   :  { %s18_s26 = sshll.u32 %s1525_s25, 4  ;;  %s1526_s1 = smov 64   ;;  %s19_s26 = int_to_ptr.vmem [resolvable:$true] %s18_s26 }
   0x7   :  { %s1527_s27 = smov 4   ;;  %s42_s30 = sshll.u32 %s1961_s2, 4  ;;  %s43_s30 = int_to_ptr.hbm [resolvable:$true] %s42_s30 }
   0x8   :  { %24 = dma.hbm_to_vmem [thread:$0]  %s17_s22, 128, %s19_s26, [#allocation4], %s1526_s1, %s1526_s1, %s1527_s27  }
   0x9   :  { %s1528_s0 = smov [#allocation8]  }
   0xa   :  { %s44_s5 = sshll.u32 %s1528_s0, 4  ;;  %s45_s5 = int_to_ptr.vmem [resolvable:$true] %s44_s5 }
   0xb   :  { %50 = dma.hbm_to_vmem [thread:$0]  %s43_s30, 512, %s45_s5, [#allocation7], %s1526_s1, %s1526_s1, %s1527_s27  }
   0xc   :  { %1516 = dma.done.wait [#allocation4], 128  }
   0xd   :  { %1517 = vsyncadd [#allocation4], 4294967168 }
   0xe   :  { %1518 = dma.done.wait [#allocation7], 1536  }
   0xf   :  { %1519 = vsyncadd [#allocation7], 4294965760  ;;  %v1259_v0 = vld [vmem:[#allocation6 + $0x30] sm:$0xf]  ;;  %v1328_v1 = vld [vmem:[#allocation6 + $0x34] sm:$0xf0] }
  0x10   :  { %v1251_v2 = vld [vmem:[#allocation6 + $0x20] sm:$0xf]  ;;  %v1260_v3 = vor.u32 %v1328_v1, %v1259_v0  ;;  %v1326_v4 = vld [vmem:[#allocation6 + $0x24] sm:$0xf0]  ;;  %v1327_v6 = vld [vmem:[#allocation6 + $0x34] sm:$0xf] }
  0x11   :  { %v1252_v5 = vor.u32 %v1326_v4, %v1251_v2  ;;  %v1261_v7 = vld [vmem:[#allocation6 + $0x38] sm:$0xf0]  ;;  %v1325_v8 = vld [vmem:[#allocation6 + $0x24] sm:$0xf]  ;;  %v1243_v9 = vld [vmem:[#allocation6 + $0x10] sm:$0xf] }
  0x12   :  { %129 = vmatpush.bf16.msra.mxu0 %v1260_v3  ;;  %v1324_v10 = vld [vmem:[#allocation6 + $0x14] sm:$0xf0]  ;;  %v1264_v11 = vor.u32 %v1327_v6, %v1261_v7  ;;  %v1253_v12 = vld [vmem:[#allocation6 + $0x28] sm:$0xf0]  ;;  %v1323_v15 = vld [vmem:[#allocation6 + $0x14] sm:$0xf] }
  0x13   :  { %v1256_v13 = vor.u32 %v1325_v8, %v1253_v12  ;;  %v1244_v14 = vor.u32 %v1324_v10, %v1243_v9  ;;  %v1245_v16 = vld [vmem:[#allocation6 + $0x18] sm:$0xf0]  ;;  %v1235_v17 = vld [vmem:[#allocation6] sm:$0xf]  ;;  %v1322_v18 = vld [vmem:[#allocation6 + $0x4] sm:$0xf0] }
  0x14   :  { %143 = vmatpush.bf16.msra.mxu1 %v1264_v11  ;;  %v1248_v19 = vor.u32 %v1323_v15, %v1245_v16  ;;  %v1236_v20 = vor.u32 %v1322_v18, %v1235_v17  ;;  %v1321_v21 = vld [vmem:[#allocation6 + $0x4] sm:$0xf]  ;;  %v1237_v22 = vld [vmem:[#allocation6 + $0x8] sm:$0xf0]  ;;  %v1320_v23 = vld [vmem:[#allocation3] sm:$0xff]  ;;  %vm121_vm0 = vcmask 523264  }
  0x15   :  { %v1240_v24 = vor.u32 %v1321_v21, %v1237_v22  ;;  %s1529_s2 = smov 120   ;;  %s1530_s6 = smov 56   ;;  %vm193_vm1 = vcmask 1043456   ;;  %vm158_vm2 = vcmask 64512   ;;  %vm211_vm3 = vcmask 60416  }
  0x16   :  { %130 = vmatpush.bf16.msra.mxu0 %v1252_v5  ;;  %s1531_s7 = smov 40   ;;  %s1532_s8 = smov 112   ;;  %vm275_vm4 = vcmask 126016   ;;  %vm338_vm5 = vcmask 191616   ;;  %vm401_vm6 = vcmask 257216   ;;  %vm464_vm7 = vcmask 322816  }
  0x17   :  { %s1533_s9 = smov 104   ;;  %s1534_s10 = smov 32   ;;  %vm527_vm8 = vcmask 388416   ;;  %vm590_vm9 = vcmask 454016   ;;  %vm653_vm10 = vcmask 519616  }
  0x18   :  { %144 = vmatpush.bf16.msra.mxu1 %v1256_v13  ;;  %s1535_s11 = smov 48   ;;  %s1536_s12 = smov 24  }
  0x19   :  { %s1537_s13 = smov 88   ;;  %s1538_s14 = smov 16  }
  0x1a   :  { %131 = vmatpush.bf16.msra.mxu0 %v1244_v14  ;;  %s1539_s15 = smov 80   ;;  %s1540_s16 = smov 72  }
  0x1b   :  { %s1541_s17 = smov 96   ;;  %s1542_s20 = smov [#allocation9]  }
  0x1c   :  { %145 = vmatpush.bf16.msra.mxu1 %v1248_v19  ;;  %s1213_s21 = sshll.u32 %s1542_s20, 4  ;;  %s1215_s26 = sshll.u32 %s1963_s4, 4  ;;  %s1214_s21 = int_to_ptr.vmem [resolvable:$true] %s1213_s21  ;;  %s1216_s26 = int_to_ptr.hbm [resolvable:$true] %s1215_s26 }
  0x1e   :  { %132 = vmatpush.bf16.msra.mxu0 %v1236_v20 }
  0x20   :  { %146 = vmatpush.bf16.msra.mxu1 %v1240_v24 }
  0x21   :  { %1265 = vmatmul.msk.bf16.vlgmr.msra.gmra.mxu0 %vm121_vm0, %v1320_v23 }
  0x23   :  { %1266 = vmatmul.msk.bf16.vlgmr.msra.gmra.mxu1 %vm121_vm0, %v1320_v23 }
  0x9e   :  { %v134_v25 = vpop.f32.mrf.mxu0 }
  0x9f   :  { %v1586_v26 = vpack.c.bf16 %v134_v25, %v134_v25 }
  0xa0   :  { %v148_v29 = vpop.f32.mrf.mxu1 }
  0xa1   :  { %213 = vrot.lane.b32.xlu2 %v1586_v26, %s1529_s2  ;;  %215 = vrot.lane.b32.xlu1 %v1586_v26, %s1530_s6  ;;  %v1618_v30 = vpack.c.bf16 %v148_v29, %v148_v29 }
  0xa2   :  { %156 = vrot.lane.b32.xlu0 %v1586_v26, %s1526_s1 }
  0xa3   :  { %v195_v31 = vsel %vm193_vm1, %v1618_v30, 0 }
  0xa4   :  { %204 = vmatpush.bf16.msra.mxu3 %v195_v31 }
  0xa6   :  { %v136_v27 = vpop.f32.mrf.mxu0 }
  0xa7   :  { %v1614_v28 = vpack.c.bf16 %v136_v27, %v136_v27 }
  0xa9   :  { %342 = vrot.lane.b32.xlu2 %v1586_v26, %s1531_s7  ;;  %277 = vrot.lane.b32.xlu1 %v1586_v26, %s1532_s8 }
  0xb1   :  { %340 = vrot.lane.b32.xlu2 %v1586_v26, %s1533_s9  ;;  %405 = vrot.lane.b32.xlu1 %v1586_v26, %s1534_s10 }
  0xb9   :  { %279 = vrot.lane.b32.xlu2 %v1586_v26, %s1535_s11 }
  0xc1   :  { %468 = vrot.lane.b32.xlu2 %v1586_v26, %s1536_s12 }
  0xc9   :  { %466 = vrot.lane.b32.xlu2 %v1586_v26, %s1537_s13 }
  0xd1   :  { %594 = vrot.lane.b32.xlu2 %v1586_v26, %s1524_s24 }
  0xd9   :  { %531 = vrot.lane.b32.xlu2 %v1586_v26, %s1538_s14 }
  0xe1   :  { %529 = vrot.lane.b32.xlu2 %v1586_v26, %s1539_s15 }
  0xe9   :  { %839 = vrot.lane.b32.xlu2 %v1614_v28, %s1531_s7 }
  0xf1   :  { %963 = vrot.lane.b32.xlu2 %v1614_v28, %s1536_s12 }
  0xf9   :  { %901 = vrot.lane.b32.xlu2 %v1614_v28, %s1534_s10 }
  0xfb   :  { %v1626_v32 = vpop.permute.xlu2 %213 }
 0x101   :  { %1085 = vrot.lane.b32.xlu2 %v1614_v28, %s1540_s16 }
 0x103   :  { %v343_v33 = vpop.permute.xlu2 %342 }
 0x104   :  { %v348_v0 = vsel %vm158_vm2, %v343_v33, 0 }
 0x10b   :  { %v1630_v34 = vpop.permute.xlu2 %340 }
 0x113   :  { %v280_v35 = vpop.permute.xlu2 %279  ;;  %v216_v36 = vpop.permute.xlu1 %215 }
 0x114   :  { %v157_v37 = vpop.permute.xlu0 %156  ;;  %v221_v38 = vsel %vm158_vm2, %v216_v36, 0  ;;  %v285_v39 = vsel %vm158_vm2, %v280_v35, 0 }
 0x115   :  { %v163_v40 = vsel %vm158_vm2, %v157_v37, 0  ;;  %230 = vmatpush.bf16.xpose.msrb.mxu3 %v221_v38  ;;  %294 = vmatpush.bf16.xpose.msrb.mxu0 %v285_v39 }
 0x116   :  { %172 = vmatpush.bf16.xpose.msra.mxu2 %v163_v40 }
 0x11b   :  { %v469_v41 = vpop.permute.xlu2 %468  ;;  %v278_v42 = vpop.permute.xlu1 %277 }
 0x11c   :  { %1271 = vmatmul.msk.bf16.vlgmr.msrb.gmra.mxu0 %vm158_vm2, %v278_v42  ;;  %v474_v6 = vsel %vm158_vm2, %v469_v41, 0 }
 0x11d   :  { %1267 = vmatmul.msk.bf16.vlgmr.msra.gmra.mxu2 %vm158_vm2, %v1586_v26 }
 0x123   :  { %v1638_v43 = vpop.permute.xlu2 %466  ;;  %v406_v44 = vpop.permute.xlu1 %405 }
 0x124   :  { %v411_v45 = vsel %vm158_vm2, %v406_v44, 0 }
 0x125   :  { %420 = vmatpush.bf16.xpose.msra.mxu0 %v411_v45 }
 0x12b   :  { %v595_v46 = vpop.permute.xlu2 %594 }
 0x12c   :  { %v600_v12 = vsel %vm158_vm2, %v595_v46, 0 }
 0x133   :  { %v532_v47 = vpop.permute.xlu2 %531 }
 0x134   :  { %v537_v48 = vsel %vm158_vm2, %v532_v47, 0 }
 0x135   :  { %546 = vmatpush.bf16.xpose.msrb.mxu0 %v537_v48 }
 0x13b   :  { %v530_v3 = vpop.permute.xlu2 %529 }
 0x143   :  { %v840_v8 = vpop.permute.xlu2 %839 }
 0x144   :  { %v845_v22 = vsel %vm158_vm2, %v840_v8, 0 }
 0x14b   :  { %v964_v13 = vpop.permute.xlu2 %963 }
 0x14c   :  { %v969_v25 = vsel %vm158_vm2, %v964_v13, 0 }
 0x153   :  { %v902_v15 = vpop.permute.xlu2 %901 }
 0x154   :  { %v907_v17 = vsel %vm158_vm2, %v902_v15, 0 }
 0x199   :  { %v1642_v49 = vpop.f32.mrf.mxu0 }
 0x19a   :  { %v300_v54 = vsel %vm158_vm2, %v1642_v49, -inf }
 0x1a0   :  { %v174_v50 = vpop.f32.mrf.mxu2 }
 0x1a1   :  { %v178_v51 = vsel %vm158_vm2, %v174_v50, -inf  ;;  %v298_v52 = vpop.f32.mrf.mxu0 }
 0x1a2   :  { %179 = vmax.xlane.f32.xlu0 %v178_v51 }
 0x1a8   :  { %v176_v53 = vpop.f32.mrf.mxu2 }
 0x1b6   :  { %592 = vrot.lane.b32.xlu0 %v1586_v26, %s1540_s16 }
 0x1be   :  { %658 = vrot.lane.b32.xlu0 %v1614_v28, %s1526_s1 }
 0x1c6   :  { %777 = vrot.lane.b32.xlu0 %v1614_v28, %s1535_s11 }
 0x1ce   :  { %961 = vrot.lane.b32.xlu0 %v1614_v28, %s1537_s13 }
 0x1d6   :  { %899 = vrot.lane.b32.xlu0 %v1614_v28, %s1541_s17 }
 0x1de   :  { %1023 = vrot.lane.b32.xlu0 %v1614_v28, %s1539_s15 }
 0x208   :  { %301 = vmax.xlane.f32.xlu0 %v300_v54 }
 0x215   :  { %v180_v55 = vpop.xlane.xlu0 %179 }
 0x216   :  { %v181_v56 = vsub.f32 %v174_v50, %v180_v55 }
 0x218   :  { %v182_v57 = vmul.f32 1.442695, %v181_v56 }
 0x21a   :  { %1356 = vpow2.f32 %v182_v57 }
 0x21c   :  { %249 = vrot.lane.b32.xlu0 %v1618_v30, %s1529_s2 }
 0x220   :  { %v1357_v58 = vpop.eup %1356 }
 0x221   :  { %v184_v59 = vsel %vm158_vm2, %v1357_v58, 0.0 }
 0x222   :  { %185 = vadd.xlane.f32.xlu1 %v184_v59 }
 0x224   :  { %312 = vrot.lane.b32.xlu0 %v1618_v30, %s1532_s8 }
 0x228   :  { %v593_v1 = vpop.permute.xlu0 %592 }
 0x230   :  { %v659_v2 = vpop.permute.xlu0 %658 }
 0x231   :  { %v664_v5 = vsel %vm158_vm2, %v659_v2, 0 }
 0x238   :  { %v778_v9 = vpop.permute.xlu0 %777 }
 0x239   :  { %v783_v11 = vsel %vm158_vm2, %v778_v9, 0 }
 0x23b   :  { %403 = vrot.lane.b32.xlu1 %v1586_v26, %s1541_s17 }
 0x240   :  { %v962_v23 = vpop.permute.xlu0 %961 }
 0x243   :  { %714 = vrot.lane.b32.xlu1 %v1614_v28, %s1530_s6 }
 0x248   :  { %v900_v24 = vpop.permute.xlu0 %899 }
 0x24b   :  { %712 = vrot.lane.b32.xlu1 %v1614_v28, %s1529_s2 }
 0x250   :  { %v1024_v26 = vpop.permute.xlu0 %1023 }
 0x253   :  { %837 = vrot.lane.b32.xlu1 %v1614_v28, %s1533_s9 }
 0x25b   :  { %775 = vrot.lane.b32.xlu1 %v1614_v28, %s1532_s8 }
 0x263   :  { %1087 = vrot.lane.b32.xlu1 %v1614_v28, %s1524_s24 }
 0x26b   :  { %1025 = vrot.lane.b32.xlu1 %v1614_v28, %s1538_s14 }
 0x27b   :  { %v302_v35 = vpop.xlane.xlu0 %301 }
 0x27c   :  { %v303_v36 = vsub.f32 %v1642_v49, %v302_v35 }
 0x27e   :  { %v304_v39 = vmul.f32 1.442695, %v303_v36 }
 0x28e   :  { %v250_v52 = vpop.permute.xlu0 %249 }
 0x28f   :  { %v255_v56 = vsel %vm193_vm1, %v250_v52, 0 }
 0x290   :  { %264 = vmatpush.bf16.msrb.mxu2 %v255_v56 }
 0x295   :  { %v186_v60 = vpop.xlane.xlu1 %185 }
 0x296   :  { %1358 = vrcp.f32 %v186_v60  ;;  %v313_v57 = vpop.permute.xlu0 %312 }
 0x297   :  { %1360 = vpow2.f32 %v304_v39 }
 0x29c   :  { %v1359_v61 = vpop.eup %1358 }
 0x29d   :  { %v188_v62 = vmul.f32 %v1359_v61, %v1357_v58  ;;  %v318_v58 = vsel %vm193_vm1, %v313_v57, 0 }
 0x29e   :  { %327 = vmatpush.bf16.msrb.mxu1 %v318_v58 }
 0x29f   :  { %v189_v63 = vpack.c.bf16 %v188_v62, %v188_v62 }
 0x2a1   :  { %1268 = vmatmul.msk.bf16.vlgmr.msra.gmra.mxu3 %vm158_vm2, %v189_v63 }
 0x2a2   :  { %357 = vmatpush.bf16.xpose.msra.mxu3 %v348_v0 }
 0x2ad   :  { %v404_v4 = vpop.permute.xlu1 %403 }
 0x2ae   :  { %1275 = vmatmul.msk.bf16.vlgmr.msra.gmra.mxu0 %vm158_vm2, %v404_v4 }
 0x2af   :  { %673 = vmatpush.bf16.xpose.msra.mxu0 %v664_v5 }
 0x2b1   :  { %1269 = vmatmul.msk.bf16.vlgmr.msrb.gmra.mxu3 %vm158_vm2, %v1626_v32 }
 0x2b2   :  { %483 = vmatpush.bf16.xpose.msrb.mxu3 %v474_v6 }
 0x2b5   :  { %v715_v7 = vpop.permute.xlu1 %714 }
 0x2b6   :  { %v720_v18 = vsel %vm158_vm2, %v715_v7, 0 }
 0x2bd   :  { %v713_v10 = vpop.permute.xlu1 %712 }
 0x2be   :  { %1279 = vmatmul.msk.bf16.vlgmr.msrb.gmra.mxu0 %vm158_vm2, %v530_v3 }
 0x2bf   :  { %792 = vmatpush.bf16.xpose.msrb.mxu0 %v783_v11 }
 0x2c1   :  { %1273 = vmatmul.msk.bf16.vlgmr.msra.gmra.mxu3 %vm158_vm2, %v1630_v34 }
 0x2c2   :  { %609 = vmatpush.bf16.xpose.msra.mxu3 %v600_v12 }
 0x2c5   :  { %v838_v14 = vpop.permute.xlu1 %837 }
 0x2cd   :  { %v776_v16 = vpop.permute.xlu1 %775 }
 0x2ce   :  { %1283 = vmatmul.msk.bf16.vlgmr.msra.gmra.mxu0 %vm158_vm2, %v1614_v28  ;;  %v1086_v28 = vpop.permute.xlu2 %1085 }
 0x2cf   :  { %916 = vmatpush.bf16.xpose.msra.mxu0 %v907_v17 }
 0x2d1   :  { %1277 = vmatmul.msk.bf16.vlgmr.msrb.gmra.mxu3 %vm158_vm2, %v1638_v43  ;;  %v1717_v43 = vpop.eup %1360 }
 0x2d2   :  { %729 = vmatpush.bf16.xpose.msrb.mxu3 %v720_v18  ;;  %v306_v46 = vsel %vm158_vm2, %v1717_v43, 0.0 }
 0x2d5   :  { %v1088_v19 = vpop.permute.xlu1 %1087 }
 0x2d6   :  { %v1093_v27 = vsel %vm158_vm2, %v1088_v19, 0 }
 0x2dd   :  { %v1026_v20 = vpop.permute.xlu1 %1025 }
 0x2de   :  { %v1031_v21 = vsel %vm158_vm2, %v1026_v20, 0  ;;  %1287 = vmatmul.msk.bf16.vlgmr.msrb.gmra.mxu0 %vm158_vm2, %v776_v16 }
 0x2df   :  { %1040 = vmatpush.bf16.xpose.msrb.mxu0 %v1031_v21 }
 0x2e1   :  { %1281 = vmatmul.msk.bf16.vlgmr.msra.gmra.mxu3 %vm158_vm2, %v593_v1 }
 0x2e2   :  { %854 = vmatpush.bf16.xpose.msra.mxu3 %v845_v22 }
 0x2ee   :  { %1291 = vmatmul.msk.bf16.vlgmr.msra.gmra.mxu0 %vm158_vm2, %v900_v24 }
 0x2f1   :  { %1285 = vmatmul.msk.bf16.vlgmr.msrb.gmra.mxu3 %vm158_vm2, %v713_v10 }
 0x2f2   :  { %978 = vmatpush.bf16.xpose.msrb.mxu3 %v969_v25  ;;  %v150_v25 = vpop.f32.mrf.mxu1 }
 0x2fe   :  { %1295 = vmatmul.msk.bf16.vlgmr.msrb.gmra.mxu0 %vm158_vm2, %v1024_v26 }
 0x301   :  { %1289 = vmatmul.msk.bf16.vlgmr.msra.gmra.mxu3 %vm158_vm2, %v838_v14 }
 0x302   :  { %1102 = vmatpush.bf16.xpose.msra.mxu3 %v1093_v27  ;;  %v1780_v27 = vpack.c.bf16 %v150_v25, %v150_v25 }
 0x311   :  { %1293 = vmatmul.msk.bf16.vlgmr.msrb.gmra.mxu3 %vm158_vm2, %v962_v23 }
 0x321   :  { %1297 = vmatmul.msk.bf16.vlgmr.msra.gmra.mxu3 %vm158_vm2, %v1086_v28 }
 0x324   :  { %v206_v29 = vpop.f32.mrf.mxu3 }
 0x325   :  { %v210_v31 = vpack.c.bf16 %v206_v29, %v206_v29 }
 0x327   :  { %212 = vst.msk [vmem:[#allocation2] sm:$0xf] %vm211_vm3, %v210_v31 }
 0x32b   :  { %v422_v32 = vpop.f32.mrf.mxu0 }
 0x32c   :  { %v208_v33 = vpop.f32.mrf.mxu3  ;;  %v426_v34 = vsel %vm158_vm2, %v422_v32, -inf }
 0x32d   :  { %427 = vmax.xlane.f32.xlu1 %v426_v34 }
 0x333   :  { %v424_v37 = vpop.f32.mrf.mxu0 }
 0x334   :  { %v1711_v38 = vpop.f32.mrf.mxu3 }
 0x335   :  { %v236_v14 = vsel %vm158_vm2, %v1711_v38, -inf }
 0x33b   :  { %v1713_v40 = vpop.f32.mrf.mxu0 }
 0x33c   :  { %v234_v41 = vpop.f32.mrf.mxu3  ;;  %v552_v42 = vsel %vm158_vm2, %v1713_v40, -inf }
 0x33d   :  { %553 = vmax.xlane.f32.xlu1 %v552_v42 }
 0x343   :  { %v550_v44 = vpop.f32.mrf.mxu0 }
 0x344   :  { %v1719_v45 = vpop.f32.mrf.mxu3 }
 0x345   :  { %307 = vadd.xlane.f32.xlu1 %v306_v46  ;;  %v363_v35 = vsel %vm158_vm2, %v1719_v45, -inf }
 0x34b   :  { %v1723_v47 = vpop.f32.mrf.mxu0 }
 0x34c   :  { %v361_v48 = vpop.f32.mrf.mxu3  ;;  %v679_v49 = vsel %vm158_vm2, %v1723_v47, -inf }
 0x34d   :  { %680 = vmax.xlane.f32.xlu2 %v679_v49 }
 0x353   :  { %v677_v50 = vpop.f32.mrf.mxu0 }
 0x354   :  { %v1727_v51 = vpop.f32.mrf.mxu3 }
 0x355   :  { %v489_v19 = vsel %vm158_vm2, %v1727_v51, -inf }
 0x35b   :  { %v1729_v53 = vpop.f32.mrf.mxu0 }
 0x35c   :  { %v487_v54 = vpop.f32.mrf.mxu3  ;;  %v798_v55 = vsel %vm158_vm2, %v1729_v53, -inf }
 0x35d   :  { %799 = vmax.xlane.f32.xlu0 %v798_v55 }
 0x35e   :  { %627 = vrot.lane.b32.xlu1 %v1618_v30, %s1540_s16 }
 0x363   :  { %v796_v59 = vpop.f32.mrf.mxu0 }
 0x364   :  { %v1737_v60 = vpop.f32.mrf.mxu3 }
 0x365   :  { %375 = vrot.lane.b32.xlu2 %v1618_v30, %s1533_s9  ;;  %v615_v61 = vsel %vm158_vm2, %v1737_v60, -inf }
 0x366   :  { %616 = vmax.xlane.f32.xlu0 %v615_v61 }
 0x36b   :  { %v1743_v62 = vpop.f32.mrf.mxu0 }
 0x36c   :  { %v613_v63 = vpop.f32.mrf.mxu3  ;;  %v922_v9 = vsel %vm158_vm2, %v1743_v62, -inf }
 0x36d   :  { %501 = vrot.lane.b32.xlu2 %v1618_v30, %s1537_s13 }
 0x373   :  { %v920_v0 = vpop.f32.mrf.mxu0 }
 0x374   :  { %v1747_v1 = vpop.f32.mrf.mxu3 }
 0x375   :  { %438 = vrot.lane.b32.xlu2 %v1618_v30, %s1541_s17  ;;  %v735_v56 = vsel %vm158_vm2, %v1747_v1, -inf }
 0x37a   :  { %564 = vrot.lane.b32.xlu0 %v1618_v30, %s1539_s15 }
 0x37b   :  { %v1753_v2 = vpop.f32.mrf.mxu0 }
 0x37c   :  { %v733_v3 = vpop.f32.mrf.mxu3  ;;  %v1046_v30 = vsel %vm158_vm2, %v1753_v2, -inf }
 0x383   :  { %v1044_v4 = vpop.f32.mrf.mxu0 }
 0x384   :  { %v1755_v5 = vpop.f32.mrf.mxu3 }
 0x385   :  { %v860_v52 = vsel %vm158_vm2, %v1755_v5, -inf }
 0x38c   :  { %v858_v6 = vpop.f32.mrf.mxu3 }
 0x394   :  { %v1757_v7 = vpop.f32.mrf.mxu3 }
 0x395   :  { %v984_v55 = vsel %vm158_vm2, %v1757_v7, -inf }
 0x39c   :  { %v982_v8 = vpop.f32.mrf.mxu3 }
 0x39e   :  { %923 = vmax.xlane.f32.xlu2 %v922_v9 }
 0x3a0   :  { %v428_v10 = vpop.xlane.xlu1 %427 }
 0x3a1   :  { %v429_v11 = vsub.f32 %v422_v32, %v428_v10  ;;  %v695_v10 = vsel %vm193_vm1, %v1780_v27, 0 }
 0x3a3   :  { %v430_v12 = vmul.f32 1.442695, %v429_v11 }
 0x3a4   :  { %v1763_v13 = vpop.f32.mrf.mxu3  ;;  %1047 = vmax.xlane.f32.xlu0 %v1046_v30 }
 0x3a5   :  { %1362 = vpow2.f32 %v430_v12  ;;  %v1108_v16 = vsel %vm158_vm2, %v1763_v13, -inf }
 0x3a6   :  { %237 = vmax.xlane.f32.xlu2 %v236_v14 }
 0x3ab   :  { %v1767_v15 = vpop.eup %1362 }
 0x3ac   :  { %v1106_v17 = vpop.f32.mrf.mxu3  ;;  %1109 = vmax.xlane.f32.xlu0 %v1108_v16  ;;  %v432_v18 = vsel %vm158_vm2, %v1767_v15, 0.0 }
 0x3ad   :  { %433 = vadd.xlane.f32.xlu1 %v432_v18 }
 0x3ae   :  { %490 = vmax.xlane.f32.xlu2 %v489_v19 }
 0x3b0   :  { %v554_v20 = vpop.xlane.xlu1 %553 }
 0x3b1   :  { %v555_v21 = vsub.f32 %v1713_v40, %v554_v20 }
 0x3b3   :  { %v556_v22 = vmul.f32 1.442695, %v555_v21 }
 0x3b5   :  { %1364 = vpow2.f32 %v556_v22 }
 0x3b8   :  { %v308_v23 = vpop.xlane.xlu1 %307 }
 0x3b9   :  { %1366 = vrcp.f32 %v308_v23 }
 0x3bb   :  { %v1776_v24 = vpop.eup %1364 }
 0x3bc   :  { %v558_v26 = vsel %vm158_vm2, %v1776_v24, 0.0 }
 0x3bd   :  { %559 = vadd.xlane.f32.xlu1 %v558_v26 }
 0x3bf   :  { %v1367_v28 = vpop.eup %1366 }
 0x3c0   :  { %v310_v29 = vmul.f32 %v1367_v28, %v1717_v43  ;;  %v681_v31 = vpop.xlane.xlu2 %680  ;;  %872 = vrot.lane.b32.xlu0 %v1780_v27, %s1533_s9 }
 0x3c1   :  { %v682_v32 = vsub.f32 %v1723_v47, %v681_v31 }
 0x3c2   :  { %v311_v33 = vpack.c.bf16 %v310_v29, %v310_v29 }
 0x3c3   :  { %v683_v34 = vmul.f32 1.442695, %v682_v32 }
 0x3c4   :  { %1272 = vmatmul.msk.bf16.vlgmr.msrb.gmra.mxu1 %vm158_vm2, %v311_v33 }
 0x3c5   :  { %1368 = vpow2.f32 %v683_v34  ;;  %364 = vmax.xlane.f32.xlu1 %v363_v35 }
 0x3c8   :  { %v376_v36 = vpop.permute.xlu2 %375 }
 0x3c9   :  { %v381_v37 = vsel %vm193_vm1, %v376_v36, 0 }
 0x3ca   :  { %390 = vmatpush.bf16.msra.mxu2 %v381_v37 }
 0x3cb   :  { %v1790_v39 = vpop.eup %1368 }
 0x3cc   :  { %v685_v40 = vsel %vm158_vm2, %v1790_v39, 0.0 }
 0x3cd   :  { %686 = vadd.xlane.f32.xlu2 %v685_v40 }
 0x3d0   :  { %v1794_v41 = vpop.permute.xlu2 %501  ;;  %v800_v42 = vpop.xlane.xlu0 %799 }
 0x3d1   :  { %v801_v43 = vsub.f32 %v1729_v53, %v800_v42  ;;  %v1813_v58 = vpop.permute.xlu1 %627 }
 0x3d3   :  { %v802_v44 = vmul.f32 1.442695, %v801_v43 }
 0x3d5   :  { %1370 = vpow2.f32 %v802_v44 }
 0x3d8   :  { %v439_v46 = vpop.permute.xlu2 %438 }
 0x3d9   :  { %v444_v47 = vsel %vm193_vm1, %v439_v46, 0  ;;  %v617_v50 = vpop.xlane.xlu0 %616 }
 0x3da   :  { %453 = vmatpush.bf16.msra.mxu1 %v444_v47  ;;  %v618_v23 = vsub.f32 %v1737_v60, %v617_v50 }
 0x3db   :  { %v1798_v48 = vpop.eup %1370 }
 0x3dc   :  { %v804_v49 = vsel %vm158_vm2, %v1798_v48, 0.0 }
 0x3dd   :  { %805 = vadd.xlane.f32.xlu1 %v804_v49 }
 0x3e5   :  { %748 = vrot.lane.b32.xlu2 %v1780_v27, %s1529_s2  ;;  %861 = vmax.xlane.f32.xlu1 %v860_v52 }
 0x3ec   :  { %v565_v53 = vpop.permute.xlu0 %564 }
 0x3ed   :  { %v570_v54 = vsel %vm193_vm1, %v565_v53, 0  ;;  %985 = vmax.xlane.f32.xlu1 %v984_v55 }
 0x3ee   :  { %579 = vmatpush.bf16.msrb.mxu1 %v570_v54 }
 0x40e   :  { %736 = vmax.xlane.f32.xlu2 %v735_v56 }
 0x411   :  { %v1811_v57 = vpop.xlane.xlu2 %923 }
 0x417   :  { %v1048_v34 = vpop.xlane.xlu0 %1047 }
 0x419   :  { %v238_v59 = vpop.xlane.xlu2 %237 }
 0x41a   :  { %v239_v61 = vsub.f32 %v1711_v38, %v238_v59 }
 0x41c   :  { %v240_v63 = vmul.f32 1.442695, %v239_v61 }
 0x41e   :  { %1372 = vpow2.f32 %v240_v63  ;;  %v1049_v63 = vsub.f32 %v1753_v2, %v1048_v34 }
 0x420   :  { %v434_v0 = vpop.xlane.xlu1 %433 }
 0x421   :  { %1374 = vrcp.f32 %v434_v0  ;;  %v491_v12 = vpop.xlane.xlu2 %490 }
 0x422   :  { %v492_v18 = vsub.f32 %v1727_v51, %v491_v12 }
 0x424   :  { %v1816_v3 = vpop.eup %1372  ;;  %v493_v19 = vmul.f32 1.442695, %v492_v18 }
 0x425   :  { %v242_v4 = vsel %vm158_vm2, %v1816_v3, 0.0 }
 0x426   :  { %243 = vadd.xlane.f32.xlu2 %v242_v4  ;;  %v1050_v4 = vmul.f32 1.442695, %v1049_v63 }
 0x427   :  { %v1375_v6 = vpop.eup %1374 }
 0x428   :  { %v436_v8 = vmul.f32 %v1375_v6, %v1767_v15 }
 0x42a   :  { %v437_v9 = vpack.c.bf16 %v436_v8, %v436_v8 }
 0x42c   :  { %1276 = vmatmul.msk.bf16.vlgmr.msra.gmra.mxu1 %vm158_vm2, %v437_v9 }
 0x42d   :  { %704 = vmatpush.bf16.msra.mxu1 %v695_v10  ;;  %v507_v10 = vsel %vm193_vm1, %v1794_v41, 0  ;;  %v925_v41 = vsub.f32 %v1743_v62, %v1811_v57 }
 0x430   :  { %v560_v38 = vpop.xlane.xlu1 %559 }
 0x431   :  { %1376 = vrcp.f32 %v560_v38 }
 0x437   :  { %v1377_v11 = vpop.eup %1376 }
 0x438   :  { %v562_v30 = vmul.f32 %v1377_v11, %v1776_v24  ;;  %v365_v14 = vpop.xlane.xlu1 %364  ;;  %v619_v24 = vmul.f32 1.442695, %v618_v23 }
 0x439   :  { %v366_v16 = vsub.f32 %v1719_v45, %v365_v14 }
 0x43a   :  { %v563_v17 = vpack.c.bf16 %v562_v30, %v562_v30 }
 0x43b   :  { %v367_v15 = vmul.f32 1.442695, %v366_v16 }
 0x43c   :  { %1280 = vmatmul.msk.bf16.vlgmr.msrb.gmra.mxu1 %vm158_vm2, %v563_v17 }
 0x43d   :  { %1378 = vpow2.f32 %v367_v15  ;;  %v926_v15 = vmul.f32 1.442695, %v925_v41 }
 0x43e   :  { %996 = vrot.lane.b32.xlu2 %v1780_v27, %s1537_s13 }
 0x440   :  { %v687_v20 = vpop.xlane.xlu2 %686 }
 0x441   :  { %1380 = vrcp.f32 %v687_v20  ;;  %v329_v21 = vpop.f32.mrf.mxu1 }
 0x442   :  { %1382 = vpow2.f32 %v493_v19  ;;  %v333_v61 = vpack.c.bf16 %v329_v21, %v329_v21  ;;  %v633_v19 = vsel %vm193_vm1, %v1813_v58, 0 }
 0x443   :  { %v1830_v22 = vpop.eup %1378  ;;  %1384 = vpow2.f32 %v619_v24 }
 0x444   :  { %v369_v45 = vsel %vm158_vm2, %v1830_v22, 0.0 }
 0x445   :  { %370 = vadd.xlane.f32.xlu1 %v369_v45 }
 0x447   :  { %v1381_v51 = vpop.eup %1380 }
 0x448   :  { %v689_v25 = vmul.f32 %v1381_v51, %v1790_v39  ;;  %v1836_v26 = vpop.eup %1382  ;;  %v1110_v39 = vpop.xlane.xlu0 %1109 }
 0x449   :  { %v331_v28 = vpop.f32.mrf.mxu1  ;;  %v495_v31 = vsel %vm158_vm2, %v1836_v26, 0.0  ;;  %v1841_v60 = vpop.eup %1384  ;;  %v1111_v44 = vsub.f32 %v1763_v13, %v1110_v39 }
 0x44a   :  { %v690_v29 = vpack.c.bf16 %v689_v25, %v689_v25  ;;  %v621_v33 = vsel %vm158_vm2, %v1841_v60, 0.0  ;;  %v749_v13 = vpop.permute.xlu2 %748 }
 0x44b   :  { %v1112_v49 = vmul.f32 1.442695, %v1111_v44  ;;  %v754_v24 = vsel %vm193_vm1, %v749_v13, 0 }
 0x44c   :  { %1284 = vmatmul.msk.bf16.vlgmr.msra.gmra.mxu1 %vm158_vm2, %v690_v29 }
 0x44d   :  { %496 = vadd.xlane.f32.xlu1 %v495_v31 }
 0x450   :  { %v1843_v32 = vpop.xlane.xlu1 %805  ;;  %v873_v29 = vpop.permute.xlu0 %872 }
 0x455   :  { %622 = vadd.xlane.f32.xlu1 %v621_v33 }
 0x458   :  { %v862_v35 = vpop.xlane.xlu1 %861 }
 0x459   :  { %v863_v36 = vsub.f32 %v1755_v5, %v862_v35 }
 0x45b   :  { %v864_v37 = vmul.f32 1.442695, %v863_v36 }
 0x45d   :  { %1386 = vpow2.f32 %v864_v37 }
 0x460   :  { %v986_v40 = vpop.xlane.xlu1 %985 }
 0x461   :  { %v987_v42 = vsub.f32 %v1757_v7, %v986_v40 }
 0x463   :  { %v1849_v43 = vpop.eup %1386  ;;  %v988_v46 = vmul.f32 1.442695, %v987_v42 }
 0x464   :  { %v866_v47 = vsel %vm158_vm2, %v1849_v43, 0.0 }
 0x465   :  { %1388 = vpow2.f32 %v988_v46 }
 0x466   :  { %1390 = vpow2.f32 %v1112_v49 }
 0x467   :  { %867 = vadd.xlane.f32.xlu2 %v866_v47 }
 0x46b   :  { %v1854_v50 = vpop.eup %1388 }
 0x46c   :  { %v990_v5 = vsel %vm158_vm2, %v1854_v50, 0.0  ;;  %v1858_v52 = vpop.eup %1390 }
 0x46d   :  { %991 = vadd.xlane.f32.xlu0 %v990_v5  ;;  %v1114_v7 = vsel %vm158_vm2, %v1858_v52, 0.0 }
 0x475   :  { %1115 = vadd.xlane.f32.xlu0 %v1114_v7 }
 0x47f   :  { %934 = vrot.lane.b32.xlu2 %v1780_v27, %s1541_s17 }
 0x481   :  { %v737_v53 = vpop.xlane.xlu2 %736 }
 0x482   :  { %v738_v54 = vsub.f32 %v1747_v1, %v737_v53 }
 0x484   :  { %v739_v55 = vmul.f32 1.442695, %v738_v54 }
 0x486   :  { %1392 = vpow2.f32 %v739_v55 }
 0x489   :  { %1058 = vrot.lane.b32.xlu0 %v1780_v27, %s1539_s15 }
 0x48c   :  { %v1867_v56 = vpop.eup %1392 }
 0x48d   :  { %v741_v59 = vsel %vm158_vm2, %v1867_v56, 0.0 }
 0x48e   :  { %742 = vadd.xlane.f32.xlu1 %v741_v59 }
 0x491   :  { %335 = vrot.lane.b32.xlu0 %v333_v61, %s1538_s14 }
 0x499   :  { %v244_v0 = vpop.xlane.xlu2 %243 }
 0x49a   :  { %1394 = vrcp.f32 %v244_v0 }
 0x49b   :  { %1396 = vpow2.f32 %v1050_v4 }
 0x4a0   :  { %v1395_v1 = vpop.eup %1394 }
 0x4a1   :  { %v246_v6 = vmul.f32 %v1395_v1, %v1816_v3  ;;  %v1874_v9 = vpop.eup %1396  ;;  %v997_v34 = vpop.permute.xlu2 %996 }
 0x4a2   :  { %v1052_v2 = vsel %vm158_vm2, %v1874_v9, 0.0 }
 0x4a3   :  { %v247_v8 = vpack.c.bf16 %v246_v6, %v246_v6 }
 0x4a5   :  { %1270 = vmatmul.msk.bf16.vlgmr.msrb.gmra.mxu2 %vm158_vm2, %v247_v8 }
 0x4a6   :  { %516 = vmatpush.bf16.msrb.mxu2 %v507_v10 }
 0x4a7   :  { %810 = vrot.lane.b32.xlu1 %v1780_v27, %s1532_s8 }
 0x4a8   :  { %1053 = vadd.xlane.f32.xlu2 %v1052_v2 }
 0x4a9   :  { %v1883_v38 = vpop.f32.mrf.mxu1 }
 0x4b1   :  { %v457_v11 = vpop.f32.mrf.mxu1 }
 0x4b8   :  { %v371_v3 = vpop.xlane.xlu1 %370 }
 0x4b9   :  { %1398 = vrcp.f32 %v371_v3  ;;  %v1885_v12 = vpop.f32.mrf.mxu1 }
 0x4bf   :  { %v1399_v30 = vpop.eup %1398 }
 0x4c0   :  { %v373_v14 = vmul.f32 %v1399_v30, %v1830_v22  ;;  %v497_v18 = vpop.xlane.xlu1 %496 }
 0x4c1   :  { %v583_v16 = vpop.f32.mrf.mxu1  ;;  %1400 = vrcp.f32 %v497_v18 }
 0x4c2   :  { %v374_v17 = vpack.c.bf16 %v373_v14, %v373_v14  ;;  %1402 = vpow2.f32 %v926_v15 }
 0x4c4   :  { %1274 = vmatmul.msk.bf16.vlgmr.msra.gmra.mxu2 %vm158_vm2, %v374_v17 }
 0x4c5   :  { %642 = vmatpush.bf16.msra.mxu2 %v633_v19 }
 0x4c7   :  { %v1401_v23 = vpop.eup %1400 }
 0x4c8   :  { %v1894_v62 = vpop.eup %1402  ;;  %v499_v57 = vmul.f32 %v1401_v23, %v1836_v26  ;;  %v623_v51 = vpop.xlane.xlu1 %622  ;;  %v878_v26 = vsel %vm193_vm1, %v873_v29, 0 }
 0x4c9   :  { %v706_v20 = vpop.f32.mrf.mxu1  ;;  %v928_v22 = vsel %vm158_vm2, %v1894_v62, 0.0  ;;  %1404 = vrcp.f32 %v623_v51 }
 0x4ca   :  { %v710_v21 = vpack.c.bf16 %v706_v20, %v706_v20  ;;  %v500_v58 = vpack.c.bf16 %v499_v57, %v499_v57 }
 0x4cc   :  { %711 = vst.msk [vmem:[#allocation2 + $0x4] sm:$0xf] %vm211_vm3, %v710_v21 }
 0x4cf   :  { %v1405_v25 = vpop.eup %1404 }
 0x4d0   :  { %v625_v28 = vmul.f32 %v1405_v25, %v1841_v60  ;;  %v1002_v60 = vsel %vm193_vm1, %v997_v34, 0 }
 0x4d1   :  { %v708_v45 = vpop.f32.mrf.mxu1  ;;  %929 = vadd.xlane.f32.xlu1 %v928_v22  ;;  %v459_v22 = vpack.c.bf16 %v1883_v38, %v1883_v38 }
 0x4d2   :  { %v626_v31 = vpack.c.bf16 %v625_v28, %v625_v28 }
 0x4d4   :  { %1278 = vmatmul.msk.bf16.vlgmr.msrb.gmra.mxu2 %vm158_vm2, %v500_v58  ;;  %v585_v58 = vpack.c.bf16 %v1885_v12, %v1885_v12 }
 0x4d5   :  { %763 = vmatpush.bf16.msrb.mxu2 %v754_v24 }
 0x4da   :  { %v868_v39 = vpop.xlane.xlu2 %867 }
 0x4e0   :  { %v992_v36 = vpop.xlane.xlu0 %991 }
 0x4e2   :  { %v935_v49 = vpop.permute.xlu2 %934 }
 0x4e3   :  { %v940_v53 = vsel %vm193_vm1, %v935_v49, 0 }
 0x4e4   :  { %1282 = vmatmul.msk.bf16.vlgmr.msra.gmra.mxu2 %vm158_vm2, %v626_v31 }
 0x4e5   :  { %887 = vmatpush.bf16.msra.mxu2 %v878_v26 }
 0x4e8   :  { %v1116_v42 = vpop.xlane.xlu0 %1115 }
 0x4ea   :  { %1120 = vrot.lane.b32.xlu1 %v1780_v27, %s1540_s16 }
 0x4fb   :  { %v1059_v54 = vpop.permute.xlu0 %1058 }
 0x501   :  { %v743_v33 = vpop.xlane.xlu1 %742 }
 0x502   :  { %1406 = vrcp.f32 %v743_v33 }
 0x503   :  { %1408 = vrcp.f32 %v868_v39  ;;  %v336_v49 = vpop.permute.xlu0 %335 }
 0x504   :  { %1410 = vrcp.f32 %v1843_v32  ;;  %v1064_v32 = vsel %vm193_vm1, %v1059_v54, 0  ;;  %v1330_v54 = vld [vmem:[#allocation8] sm:$0xff] }
 0x505   :  { %1412 = vrcp.f32 %v992_v36 }
 0x508   :  { %v1407_v35 = vpop.eup %1406 }
 0x509   :  { %v745_v37 = vmul.f32 %v1407_v35, %v1867_v56  ;;  %v1409_v44 = vpop.eup %1408 }
 0x50a   :  { %v1411_v27 = vpop.eup %1410  ;;  %v870_v46 = vmul.f32 %v1409_v44, %v1849_v43 }
 0x50b   :  { %v746_v40 = vpack.c.bf16 %v745_v37, %v745_v37  ;;  %v808_v47 = vmul.f32 %v1411_v27, %v1798_v48  ;;  %v1413_v48 = vpop.eup %1412 }
 0x50c   :  { %v871_v13 = vpack.c.bf16 %v870_v46, %v870_v46  ;;  %v994_v43 = vmul.f32 %v1413_v48, %v1854_v50 }
 0x50d   :  { %1286 = vmatmul.msk.bf16.vlgmr.msrb.gmra.mxu2 %vm158_vm2, %v746_v40  ;;  %v809_v55 = vpack.c.bf16 %v808_v47, %v808_v47 }
 0x50e   :  { %1011 = vmatpush.bf16.msrb.mxu2 %v1002_v60  ;;  %v995_v59 = vpack.c.bf16 %v994_v43, %v994_v43 }
 0x519   :  { %v811_v5 = vpop.permute.xlu1 %810 }
 0x51a   :  { %v816_v7 = vsel %vm193_vm1, %v811_v5, 0  ;;  %v1333_v5 = vld [vmem:[#allocation8 + $0x18] sm:$0xff] }
 0x51b   :  { %825 = vmatpush.bf16.msrb.mxu1 %v816_v7  ;;  %v1054_v8 = vpop.xlane.xlu2 %1053  ;;  %1197 = vmatpush.bf16.msra.mxu0 %v1333_v5  ;;  %v1332_v7 = vld [vmem:[#allocation8 + $0x10] sm:$0xff] }
 0x51d   :  { %1290 = vmatmul.msk.bf16.vlgmr.msra.gmra.mxu2 %vm158_vm2, %v871_v13 }
 0x51e   :  { %1288 = vmatmul.msk.bf16.vlgmr.msrb.gmra.mxu1 %vm158_vm2, %v809_v55 }
 0x51f   :  { %949 = vmatpush.bf16.msra.mxu1 %v940_v53  ;;  %1198 = vmatpush.bf16.msra.mxu0 %v1332_v7  ;;  %v1331_v53 = vld [vmem:[#allocation8 + $0x8] sm:$0xff] }
 0x523   :  { %1073 = vmatpush.bf16.msrb.mxu1 %v1064_v32  ;;  %1199 = vmatpush.bf16.msra.mxu0 %v1331_v53 }
 0x527   :  { %1200 = vmatpush.bf16.msra.mxu0 %v1330_v54 }
 0x528   :  { %v266_v56 = vpop.f32.mrf.mxu2 }
 0x529   :  { %v270_v26 = vpack.c.bf16 %v266_v56, %v266_v56 }
 0x52d   :  { %1294 = vmatmul.msk.bf16.vlgmr.msrb.gmra.mxu2 %vm158_vm2, %v995_v59 }
 0x530   :  { %v268_v61 = vpop.f32.mrf.mxu2 }
 0x544   :  { %v930_v63 = vpop.xlane.xlu1 %929 }
 0x545   :  { %1414 = vrcp.f32 %v930_v63 }
 0x546   :  { %1416 = vrcp.f32 %v1054_v8 }
 0x547   :  { %v392_v0 = vpop.f32.mrf.mxu2  ;;  %1418 = vrcp.f32 %v1116_v42 }
 0x548   :  { %v396_v4 = vpack.c.bf16 %v392_v0, %v392_v0  ;;  %v1355_v0 = vld [vmem:[%s1962_s3] ss:$0 sm:$0xff] }
 0x54a   :  { %398 = vrot.lane.b32.xlu2 %v396_v4, %s1536_s12 }
 0x54b   :  { %v1415_v1 = vpop.eup %1414 }
 0x54c   :  { %v932_v6 = vmul.f32 %v1415_v1, %v1894_v62  ;;  %v1417_v50 = vpop.eup %1416 }
 0x54d   :  { %v1419_v3 = vpop.eup %1418  ;;  %v1056_v30 = vmul.f32 %v1417_v50, %v1874_v9 }
 0x54e   :  { %v933_v10 = vpack.c.bf16 %v932_v6, %v932_v6  ;;  %v1118_v41 = vmul.f32 %v1419_v3, %v1858_v52 }
 0x54f   :  { %v394_v2 = vpop.f32.mrf.mxu2  ;;  %v1057_v17 = vpack.c.bf16 %v1056_v30, %v1056_v30 }
 0x550   :  { %1292 = vmatmul.msk.bf16.vlgmr.msra.gmra.mxu1 %vm158_vm2, %v933_v10  ;;  %v1119_v18 = vpack.c.bf16 %v1118_v41, %v1118_v41 }
 0x557   :  { %v518_v11 = vpop.f32.mrf.mxu2 }
 0x558   :  { %v522_v24 = vpack.c.bf16 %v518_v11, %v518_v11 }
 0x55c   :  { %v1121_v14 = vpop.permute.xlu1 %1120 }
 0x55d   :  { %v1126_v16 = vsel %vm193_vm1, %v1121_v14, 0 }
 0x55e   :  { %1135 = vmatpush.bf16.msra.mxu2 %v1126_v16 }
 0x55f   :  { %v520_v15 = vpop.f32.mrf.mxu2 }
 0x560   :  { %1296 = vmatmul.msk.bf16.vlgmr.msrb.gmra.mxu1 %vm158_vm2, %v1057_v17 }
 0x561   :  { %1298 = vmatmul.msk.bf16.vlgmr.msra.gmra.mxu2 %vm158_vm2, %v1119_v18 }
 0x567   :  { %v644_v19 = vpop.f32.mrf.mxu2 }
 0x568   :  { %v648_v60 = vpack.c.bf16 %v644_v19, %v644_v19 }
 0x56f   :  { %v646_v20 = vpop.f32.mrf.mxu2 }
 0x590   :  { %v765_v21 = vpop.f32.mrf.mxu2 }
 0x591   :  { %v769_v28 = vpack.c.bf16 %v765_v21, %v765_v21 }
 0x598   :  { %v767_v23 = vpop.f32.mrf.mxu2 }
 0x59b   :  { %v827_v62 = vpop.f32.mrf.mxu1 }
 0x59c   :  { %v831_v57 = vpack.c.bf16 %v827_v62, %v827_v62 }
 0x59e   :  { %833 = vrot.lane.b32.xlu1 %v831_v57, %s1538_s14 }
 0x5a0   :  { %v889_v52 = vpop.f32.mrf.mxu2 }
 0x5a1   :  { %v893_v12 = vpack.c.bf16 %v889_v52, %v889_v52 }
 0x5a3   :  { %v829_v9 = vpop.f32.mrf.mxu1 }
 0x5a4   :  { %v399_v32 = vpop.permute.xlu2 %398 }
 0x5a6   :  { %461 = vrot.lane.b32.xlu1 %v459_v22, %s1534_s10 }
 0x5a8   :  { %v891_v45 = vpop.f32.mrf.mxu2 }
 0x5ae   :  { %587 = vrot.lane.b32.xlu1 %v585_v58, %s1535_s11 }
 0x5b0   :  { %v1013_v51 = vpop.f32.mrf.mxu2 }
 0x5b1   :  { %v1017_v39 = vpack.c.bf16 %v1013_v51, %v1013_v51 }
 0x5b6   :  { %524 = vrot.lane.b32.xlu1 %v522_v24, %s1531_s7 }
 0x5b8   :  { %v1015_v25 = vpop.f32.mrf.mxu2 }
 0x5be   :  { %771 = vrot.lane.b32.xlu1 %v769_v28, %s1524_s24 }
 0x5cd   :  { %v951_v29 = vpop.f32.mrf.mxu1 }
 0x5ce   :  { %v955_v31 = vpack.c.bf16 %v951_v29, %v951_v29 }
 0x5d0   :  { %957 = vrot.lane.b32.xlu0 %v955_v31, %s1534_s10 }
 0x5d5   :  { %v953_v38 = vpop.f32.mrf.mxu1 }
 0x5d8   :  { %272 = vrot.lane.b32.xlu0 %v270_v26, %s1524_s24 }
 0x5dd   :  { %v1075_v33 = vpop.f32.mrf.mxu1 }
 0x5de   :  { %v1079_v34 = vpack.c.bf16 %v1075_v33, %v1075_v33 }
 0x5e0   :  { %895 = vrot.lane.b32.xlu0 %v893_v12, %s1536_s12  ;;  %1081 = vrot.lane.b32.xlu2 %v1079_v34, %s1535_s11 }
 0x5e4   :  { %v1137_v35 = vpop.f32.mrf.mxu2 }
 0x5e5   :  { %v1141_v36 = vpack.c.bf16 %v1137_v35, %v1137_v35  ;;  %v1077_v37 = vpop.f32.mrf.mxu1 }
 0x5e7   :  { %1143 = vrot.lane.b32.xlu1 %v1141_v36, %s1530_s6 }
 0x5e8   :  { %1019 = vrot.lane.b32.xlu0 %v1017_v39, %s1531_s7 }
 0x5ec   :  { %v1139_v40 = vpop.f32.mrf.mxu2 }
 0x5f0   :  { %650 = vrot.lane.b32.xlu0 %v648_v60, %s1530_s6 }
 0x610   :  { %v834_v42 = vpop.permute.xlu1 %833 }
 0x618   :  { %v462_v44 = vpop.permute.xlu1 %461 }
 0x620   :  { %v588_v27 = vpop.permute.xlu1 %587 }
 0x628   :  { %v525_v46 = vpop.permute.xlu1 %524 }
 0x630   :  { %v772_v47 = vpop.permute.xlu1 %771 }
 0x631   :  { %774 = vst.msk [vmem:[#allocation2 + $0x4] sm:$0xf] %vm275_vm4, %v772_v47 }
 0x632   :  { %836 = vst.msk [vmem:[#allocation2 + $0x4] sm:$0xf] %vm338_vm5, %v834_v42 }
 0x63a   :  { %v1082_v56 = vpop.permute.xlu2 %1081 }
 0x642   :  { %v958_v13 = vpop.permute.xlu0 %957 }
 0x64a   :  { %v273_v55 = vpop.permute.xlu0 %272 }
 0x64b   :  { %276 = vst.msk [vmem:[#allocation2] sm:$0xf] %vm275_vm4, %v273_v55 }
 0x64c   :  { %339 = vst.msk [vmem:[#allocation2] sm:$0xf] %vm338_vm5, %v336_v49 }
 0x64d   :  { %402 = vst.msk [vmem:[#allocation2] sm:$0xf] %vm401_vm6, %v399_v32 }
 0x64e   :  { %465 = vst.msk [vmem:[#allocation2] sm:$0xf] %vm464_vm7, %v462_v44 }
 0x64f   :  { %528 = vst.msk [vmem:[#allocation2] sm:$0xf] %vm527_vm8, %v525_v46 }
 0x650   :  { %591 = vst.msk [vmem:[#allocation2] sm:$0xf] %vm590_vm9, %v588_v27 }
 0x652   :  { %v896_v48 = vpop.permute.xlu0 %895 }
 0x653   :  { %898 = vst.msk [vmem:[#allocation2 + $0x4] sm:$0xf] %vm401_vm6, %v896_v48 }
 0x654   :  { %960 = vst.msk [vmem:[#allocation2 + $0x4] sm:$0xf] %vm464_vm7, %v958_v13 }
 0x659   :  { %v1144_v59 = vpop.permute.xlu1 %1143 }
 0x65a   :  { %v1020_v43 = vpop.permute.xlu0 %1019 }
 0x65b   :  { %1022 = vst.msk [vmem:[#allocation2 + $0x4] sm:$0xf] %vm527_vm8, %v1020_v43 }
 0x65c   :  { %1084 = vst.msk [vmem:[#allocation2 + $0x4] sm:$0xf] %vm590_vm9, %v1082_v56 }
 0x65d   :  { %1146 = vst.msk [vmem:[#allocation2 + $0x4] sm:$0xf] %vm653_vm10, %v1144_v59 }
 0x662   :  { %v651_v61 = vpop.permute.xlu0 %650 }
 0x663   :  { %654 = vst.msk [vmem:[#allocation2] sm:$0xf] %vm653_vm10, %v651_v61 }
 0x66a   :  { %v1329_v63 = vld [vmem:[#allocation2] sm:$0xff] }
 0x66b   :  { %1319 = vmatmul.msk.bf16.vlgmr.msra.gmra.mxu0 %vm121_vm0, %v1329_v63 }
 0x6e8   :  { %v1202_v4 = vpop.f32.mrf.mxu0 }
 0x6e9   :  { %v1203_v1 = vadd.f32 %v1355_v0, %v1202_v4 }
 0x6eb   :  { %1207 = vst.msk [vmem:[#allocation9] sm:$0xff] %vm121_vm0, %v1203_v1 }
 0x6f0   :  { %v1204_v6 = vpop.f32.mrf.mxu0 }
 0x6f1   :  { %v1205_v8 = vadd.f32 %v1355_v0, %v1204_v6 }
 0x6f3   :  { %1208 = vst.msk [vmem:[#allocation9 + $0x8] sm:$0xff] %vm121_vm0, %v1205_v8 }
 0x6f4   :  { %1221 = dma.vmem_to_hbm [thread:$0]  %s1214_s21, 256, %s1216_s26, [#allocation5], %s1523_s23, %s1523_s23, %s1524_s24  }
 0x6f5   :  { %1520 = dma.done.wait [#allocation5], 256  }
 0x6f6   :  { %1521 = vsyncadd [#allocation5], 4294967040 }
 0x6f7   :  { %1226 = vsyncpa [#allocation4], 1 }
 0x6f8   :  { %1227 = vsyncpa [#allocation7], 1 }
 0x6f9   :  { %1228 = vsyncpa [#allocation5], 1 }

</bundles_post_ra>
